<compile_context>
chip_gen: v7x
topology: tpu7x:2x2x1
jax: 0.10.0
libtpu: 0.0.40
codegen_flags: <defaults>
</compile_context>

<pallas_src>
import functools
import numpy as np

import jax
import jax.numpy as jnp
from jax import lax
from jax.experimental import pallas as pl
from jax.experimental.pallas import tpu as pltpu

# ---------------- small, deterministic configuration ----------------
DIM = 32                 # conformer dim
DEPTH = 1
DIM_HEAD = 16
HEADS = 2
FF_MULT = 4
CONV_EXPANSION = 2
CONV_KERNEL = 5
CODEBOOK_SIZE = 16
NUM_QUANTIZERS = 4
GROUPED_QUANTIZERS = 1
NUM_CODES_WITH_MASK = CODEBOOK_SIZE + 1
NUM_EFF_Q = NUM_QUANTIZERS * GROUPED_QUANTIZERS
SEM_DIM = 1024           # fixed by sem_cond_proj = nn.Linear(1024, dim)

BATCH = 2
ACOUSTIC_LEN = 8         # n (acoustic frames)
SEM_LEN = 6              # semantic length (>= ceil(n*2/3)+1)

INNER_ATTN = HEADS * DIM_HEAD          # 32
INNER_CONV = DIM * CONV_EXPANSION      # 64
QK_WIDTH = 2 * INNER_ATTN              # 64  (q || k rotary slab)
LOGITS_RAW = NUM_EFF_Q * CODEBOOK_SIZE # 64
LOGITS_PAD = 128                       # lane-dense final store width

NUM_GLOBAL = 7
PARAMS_PER_BLOCK = 28
NUM_TAIL = 7


# =====================================================================
# The single fused Pallas kernel.
# One grid step processes R rows (R = all B*n rows by default; R = n per step
# when splitting the batch across v7x's two TensorCores).  All batch-boundary
# handling lives in precomputed masks so the body is identical either way.
# =====================================================================
def _fused_forward_kernel(depth, *refs):
    out_ref = refs[-1]
    (x_ref, cos_ref, sin_ref, rot_ref, headq_ref, abias_ref, sel_ref) = refs[:NUM_GLOBAL]
    pos = NUM_GLOBAL
    block_refs = []
    for _ in range(depth):
        block_refs.append(refs[pos:pos + PARAMS_PER_BLOCK])
        pos += PARAMS_PER_BLOCK
    (heads_w_ref, heads_b_ref, lln_g_ref, lln_b_ref,
     avg_ref, emx_w_ref, emx_b_ref) = refs[pos:pos + NUM_TAIL]

    f32 = jnp.float32
    bf16 = jnp.bfloat16

    def mm(a, w):
        # activation x (bf16) weight on the MXU, f32 accumulate
        return jnp.dot(a.astype(w.dtype), w, preferred_element_type=f32)

    def mm_nt(a, b):
        # (M, K) x (N, K)^T without materializing a transpose
        return lax.dot_general(a.astype(bf16), b.astype(bf16),
                               (((1,), (1,)), ((), ())),
                               preferred_element_type=f32)

    def sigmoid(x):
        return pl.reciprocal(1.0 + jnp.exp(-x), approx=True)

    def swish(x):
        return x * sigmoid(x)

    def ln(x, g, b, eps=1e-5):
        m = jnp.mean(x, axis=-1, keepdims=True)
        v = jnp.mean(jnp.square(x - m), axis=-1, keepdims=True)
        return (x - m) * lax.rsqrt(v + eps) * g + b

    x = x_ref[...]                  # (R, DIM) f32: code embeds + sem cond (hoisted)
    R = x.shape[0]
    cos2 = cos_ref[...]             # (R, QK_WIDTH)  rotary, tiled across q/k heads
    sin2 = sin_ref[...]
    rot_m = rot_ref[...]            # (QK_WIDTH, QK_WIDTH) bf16 rotate-half sign/permutation
    headq = headq_ref[...]          # (2R, INNER_ATTN) head block-stacking mask
    abias = abias_ref[...]          # (2R, R) 0 / -1e9 batch-separation bias
    sel0 = sel_ref[...]             # (1, INNER_ATTN) head-0 output lane select
    scale = DIM_HEAD ** -0.5
    pad_l = CONV_KERNEL // 2

    for bp in block_refs:
        (ff1_ln_g, ff1_ln_b, ff1_w1, ff1_b1, ff1_w2, ff1_b2,
         attn_ln_g, attn_ln_b, qkv_w, out_w, out_b,
         conv_ln_g, conv_ln_b, pw1_w, pw1_b, cmw, dw_b, chan_g, pw2_w, pw2_b,
         ff2_ln_g, ff2_ln_b, ff2_w1, ff2_b1, ff2_w2, ff2_b2,
         post_ln_g, post_ln_b) = bp

        # ---- ff1: x = 0.5 * FF(LN(x)) + x
        h = ln(x, ff1_ln_g[...], ff1_ln_b[...])
        h = swish(mm(h, ff1_w1[...]) + ff1_b1[...])
        h = mm(h, ff1_w2[...]) + ff1_b2[...]
        x = 0.5 * h + x

        # ---- attention: x = Attn(LN(x)) + x
        h = ln(x, attn_ln_g[...], attn_ln_b[...])
        qkv = mm(h, qkv_w[...])                               # (R, 3*INNER)
        qk = qkv[:, :QK_WIDTH]                                # [q_h0 q_h1 k_h0 k_h1]
        v = qkv[:, QK_WIDTH:]                                 # [v_h0 v_h1]
        # rotary on the whole q||k slab: one sign/permutation matmul + VPU FMAs
        qk_rot = qk * cos2 + mm(qk, rot_m) * sin2
        q_rot = qk_rot[:, :INNER_ATTN]
        k_rot = qk_rot[:, INNER_ATTN:]
        # head-block-stacked queries: rows 0:R = head0, rows R:2R = head1
        qs = jnp.concatenate([q_rot, q_rot], axis=0) * headq  # (2R, INNER)
        s = mm_nt(qs, k_rot) * scale + abias                  # (2R, R)
        s = s - jnp.max(s, axis=-1, keepdims=True)
        p = jnp.exp(s)
        p = p * pl.reciprocal(jnp.sum(p, axis=-1, keepdims=True), approx=True)
        ov = jnp.dot(p.astype(bf16), v.astype(bf16),
                     preferred_element_type=f32)              # (2R, INNER)
        o = ov[:R] * sel0 + ov[R:] * (1.0 - sel0)             # heads already concatenated
        x = mm(o, out_w[...]) + out_b[...] + x

        # ---- conv module: LN -> 1x1 -> GLU -> dwconv (rolls) -> swish -> ChanLN -> 1x1
        h = ln(x, conv_ln_g[...], conv_ln_b[...])
        h = mm(h, pw1_w[...]) + pw1_b[...]                    # (R, 2*IC)
        h = h[:, :INNER_CONV] * sigmoid(h[:, INNER_CONV:])    # GLU (channel split)
        acc = dw_b[...] + jnp.zeros_like(h)
        for k in range(CONV_KERNEL):
            shift = (pad_l - k) % R
            hk = h if shift == 0 else pltpu.roll(h, shift, 0)
            acc = acc + hk * cmw[k]                           # mask*weight folded (VPU)
        h = swish(acc)
        # ChanLayerNorm (channels-last => last axis), var clamped at 1e-6, no bias
        cm = jnp.mean(h, axis=-1, keepdims=True)
        cv = jnp.mean(jnp.square(h - cm), axis=-1, keepdims=True)
        h = (h - cm) * lax.rsqrt(jnp.maximum(cv, 1e-6)) * chan_g[...]
        x = mm(h, pw2_w[...]) + pw2_b[...] + x

        # ---- ff2
        h = ln(x, ff2_ln_g[...], ff2_ln_b[...])
        h = swish(mm(h, ff2_w1[...]) + ff2_b1[...])
        h = mm(h, ff2_w2[...]) + ff2_b2[...]
        x = 0.5 * h + x

        # ---- post norm
        x = ln(x, post_ln_g[...], post_ln_b[...])

    # ---- heads + to_logits: per-quantizer LN via block-averaging matmul (no lane
    #      slicing / concats), then block-diagonal EinMix padded to 128 lanes.
    e = mm(x, heads_w_ref[...]) + heads_b_ref[...]            # (R, DIM*GQ) = (R, 128)
    avg = avg_ref[...]
    mean = jnp.dot(e, avg, preferred_element_type=f32)
    d = e - mean
    var = jnp.dot(d * d, avg, preferred_element_type=f32)
    y = d * lax.rsqrt(var + 1e-5) * lln_g_ref[...] + lln_b_ref[...]
    logits = mm(y, emx_w_ref[...]) + emx_b_ref[...]           # (R, LOGITS_PAD)
    out_ref[...] = logits.astype(out_ref.dtype)               # lane-dense (128) store


# =====================================================================
# Forward wrapper (embedding gathers + static interpolation in JAX,
# everything else inside the fused kernel)
# =====================================================================
def conformer_wrapper_forward(params, codes, sem_codes, *, num_grid_steps=1):
    """codes: (b, n*gq) int32, sem_codes: (b, sem_len) int32 -> (b, n*gq, codebook).

    num_grid_steps=1 (default): one grid step over the whole (b*n)-row slab —
    best on single-TensorCore v5e/v6e.  On v7x set num_grid_steps=b so the
    "parallel" batch axis is split across the two TensorCores.
    """
    b, total = codes.shape
    gq = NUM_EFF_Q
    assert total % gq == 0
    n = total // gq
    assert b % num_grid_steps == 0
    nseg = b // num_grid_steps          # batch elements per grid step
    R = nseg * n                        # rows per grid step
    assert R % 8 == 0                   # sublane alignment for the conv rolls

    f32 = jnp.float32
    bf16 = jnp.bfloat16
    w16 = lambda a: a.astype(bf16)
    r2 = lambda v: v.reshape(1, -1).astype(f32)

    # ---------------- embedding gathers (JAX) ----------------
    offsets = jnp.arange(gq, dtype=jnp.int32) * NUM_CODES_WITH_MASK
    x_idx = codes.reshape(b, n, gq) + offsets
    code_sum = jnp.sum(params['code_embeds'][x_idx], axis=2)            # (b, n, dim)

    # Semantic conditioning: project the (17, 1024) table to dim FIRST (hoisted
    # out of the kernel; exact because the interpolation weights sum to 1 and the
    # projection is affine), then gather + 2/3-rate interpolate at width dim.
    sem_tab = (params['sem_code_embeds'] @ params['sem_cond_proj_w']
               + params['sem_cond_proj_b'])                             # (17, dim)
    sem = sem_tab[sem_codes]                                            # (b, sl, dim)
    sl = sem.shape[1]
    fetch = np.arange(n) * 2.0 / 3.0
    ii = np.clip(fetch.astype(np.int64), 0, sl - 1)
    res = (fetch - ii).astype(np.float32)
    inext = np.clip(ii + 1, 0, sl - 1)
    sem_up = (sem[:, ii] * (1.0 - res)[None, :, None]
              + sem[:, inext] * res[None, :, None])                     # (b, n, dim)

    x0 = (code_sum + sem_up).astype(f32).reshape(b * n, DIM)

    # ---------------- static tables / masks (numpy -> jit constants) -------------
    half = DIM_HEAD // 2
    inv_freq = 1.0 / (10000.0 ** (np.arange(0, DIM_HEAD, 2, dtype=np.float64) / DIM_HEAD))
    tpos_n = np.arange(n, dtype=np.float64)
    freqs = np.concatenate([tpos_n[:, None] * inv_freq[None, :]] * 2, axis=-1)  # (n, DIM_HEAD)
    cos2 = np.tile(np.tile(np.cos(freqs), (nseg, 1)), (1, 2 * HEADS)).astype(np.float32)
    sin2 = np.tile(np.tile(np.sin(freqs), (nseg, 1)), (1, 2 * HEADS)).astype(np.float32)

    # rotate_half as a sign/permutation matrix acting per 16-wide group of q||k
    rot_m = np.zeros((QK_WIDTH, QK_WIDTH), np.float32)
    for g in range(2 * HEADS):
        off = g * DIM_HEAD
        for i in range(half):
            rot_m[off + half + i, off + i] = -1.0
            rot_m[off + i, off + half + i] = 1.0

    # head block-stacking mask, batch-separation attention bias, output head select
    headq = np.zeros((2 * R, INNER_ATTN), np.float32)
    headq[:R, :DIM_HEAD] = 1.0
    headq[R:, DIM_HEAD:] = 1.0
    seg_id = np.arange(R) // n
    same = (seg_id[:, None] == seg_id[None, :])
    abias = np.where(same, 0.0, -1e9).astype(np.float32)
    abias = np.concatenate([abias, abias], axis=0)                      # (2R, R)
    sel0 = np.zeros((1, INNER_ATTN), np.float32)
    sel0[:, :DIM_HEAD] = 1.0

    # depthwise-conv roll masks (zero "same" padding + batch-boundary separation)
    pad_l = CONV_KERNEL // 2
    tpos = np.arange(R)
    conv_mask = np.zeros((CONV_KERNEL, R, 1), np.float32)
    for k in range(CONV_KERNEL):
        src = tpos + k - pad_l
        valid = (src >= 0) & (src < R) & ((np.clip(src, 0, R - 1) // n) == seg_id)
        conv_mask[k, :, 0] = valid.astype(np.float32)

    # per-quantizer LayerNorm averaging matrix (block-diagonal, 1/DIM blocks)
    avg_m = np.kron(np.eye(NUM_EFF_Q), np.full((DIM, DIM), 1.0 / DIM)).astype(np.float32)

    # ---------------- kernel operand list ----------------
    inputs = [x0,
              jnp.asarray(cos2), jnp.asarray(sin2),
              w16(jnp.asarray(rot_m)),
              jnp.asarray(headq), jnp.asarray(abias), jnp.asarray(sel0)]
    for blk in params['blocks']:
        qkv_w = jnp.concatenate([blk['to_q_w'], blk['to_kv_w']], axis=1)
        cmw = jnp.asarray(conv_mask) * blk['conv_dw_w'][:, None, :]     # (K, R, IC)
        inputs += [
            r2(blk['ff1_ln_g']), r2(blk['ff1_ln_b']),
            w16(blk['ff1_w1']), r2(blk['ff1_b1']), w16(blk['ff1_w2']), r2(blk['ff1_b2']),
            r2(blk['attn_ln_g']), r2(blk['attn_ln_b']),
            w16(qkv_w), w16(blk['to_out_w']), r2(blk['to_out_b']),
            r2(blk['conv_ln_g']), r2(blk['conv_ln_b']),
            w16(blk['conv_pw1_w']), r2(blk['conv_pw1_b']),
            cmw.astype(f32), r2(blk['conv_dw_b']), r2(blk['conv_chan_g']),
            w16(blk['conv_pw2_w']), r2(blk['conv_pw2_b']),
            r2(blk['ff2_ln_g']), r2(blk['ff2_ln_b']),
            w16(blk['ff2_w1']), r2(blk['ff2_b1']), w16(blk['ff2_w2']), r2(blk['ff2_b2']),
            r2(blk['post_ln_g']), r2(blk['post_ln_b']),
        ]

    # block-diagonal EinMix, padded to 128 output lanes (lane-dense final store)
    w_bd = jnp.zeros((NUM_EFF_Q * DIM, LOGITS_PAD), f32)
    for q in range(NUM_EFF_Q):
        w_bd = w_bd.at[q * DIM:(q + 1) * DIM,
                       q * CODEBOOK_SIZE:(q + 1) * CODEBOOK_SIZE].set(params['einmix_w'][q])
    emx_b = jnp.zeros((1, LOGITS_PAD), f32).at[:, :LOGITS_RAW].set(
        params['einmix_b'].reshape(1, -1))
    inputs += [
        w16(params['heads_w']), r2(params['heads_b']),
        jnp.tile(r2(params['logits_ln_g']), (1, NUM_EFF_Q)),
        jnp.tile(r2(params['logits_ln_b']), (1, NUM_EFF_Q)),
        jnp.asarray(avg_m), w16(w_bd), emx_b,
    ]

    def const_spec(a):
        nd = np.ndim(a)
        return pl.BlockSpec(tuple(np.shape(a)), lambda bb, _nd=nd: (0,) * _nd)

    in_specs = [pl.BlockSpec((R, DIM), lambda bb: (bb, 0))]
    in_specs += [const_spec(a) for a in inputs[1:]]

    out = pl.pallas_call(
        functools.partial(_fused_forward_kernel, len(params['blocks'])),
        out_shape=jax.ShapeDtypeStruct((b * n, LOGITS_PAD), f32),
        grid=(num_grid_steps,),
        in_specs=in_specs,
        out_specs=pl.BlockSpec((R, LOGITS_PAD), lambda bb: (bb, 0)),
        compiler_params=pltpu.CompilerParams(dimension_semantics=("parallel",)),
    )(*inputs)

    # rows: (b, n) ; cols: (q, codebook) padded to 128 -> (b, n*q, codebook)
    logits = out[:, :LOGITS_RAW].reshape(b, n, NUM_EFF_Q, CODEBOOK_SIZE)
    return logits.reshape(b, n * NUM_EFF_Q, CODEBOOK_SIZE)
    # TODO(synk): self.project2 (Conv1d stride-2) is defined in __init__ but never used in forward.


# =====================================================================
# Deterministic parameter initialization (synthetic, not a checkpoint)
# =====================================================================
def init_params(key):
    keys = iter(jax.random.split(key, 256))

    def nrm(shape, scale=0.02):
        return jax.random.normal(next(keys), shape, jnp.float32) * scale

    inner_attn = INNER_ATTN
    inner_conv = INNER_CONV
    p = {
        'code_embeds': nrm((NUM_CODES_WITH_MASK * NUM_EFF_Q, DIM)),
        'sem_code_embeds': nrm((NUM_CODES_WITH_MASK, SEM_DIM)),
        'sem_cond_proj_w': nrm((SEM_DIM, DIM)),
        'sem_cond_proj_b': jnp.zeros((DIM,), jnp.float32),
        'heads_w': nrm((DIM, DIM * NUM_EFF_Q)),
        'heads_b': jnp.zeros((DIM * NUM_EFF_Q,), jnp.float32),
        'logits_ln_g': jnp.ones((DIM,), jnp.float32),
        'logits_ln_b': jnp.zeros((DIM,), jnp.float32),
        'einmix_w': nrm((NUM_EFF_Q, DIM, CODEBOOK_SIZE)),
        'einmix_b': jnp.zeros((NUM_EFF_Q, CODEBOOK_SIZE), jnp.float32),
    }
    blocks = []
    for _ in range(DEPTH):
        blocks.append({
            'ff1_ln_g': jnp.ones((DIM,)), 'ff1_ln_b': jnp.zeros((DIM,)),
            'ff1_w1': nrm((DIM, DIM * FF_MULT)), 'ff1_b1': jnp.zeros((DIM * FF_MULT,)),
            'ff1_w2': nrm((DIM * FF_MULT, DIM)), 'ff1_b2': jnp.zeros((DIM,)),
            'attn_ln_g': jnp.ones((DIM,)), 'attn_ln_b': jnp.zeros((DIM,)),
            'to_q_w': nrm((DIM, inner_attn)),
            'to_kv_w': nrm((DIM, inner_attn * 2)),
            'to_out_w': nrm((inner_attn, DIM)), 'to_out_b': jnp.zeros((DIM,)),
            'conv_ln_g': jnp.ones((DIM,)), 'conv_ln_b': jnp.zeros((DIM,)),
            'conv_pw1_w': nrm((DIM, inner_conv * 2)), 'conv_pw1_b': jnp.zeros((inner_conv * 2,)),
            'conv_dw_w': nrm((CONV_KERNEL, inner_conv)), 'conv_dw_b': jnp.zeros((inner_conv,)),
            'conv_chan_g': jnp.ones((inner_conv,)),
            'conv_pw2_w': nrm((inner_conv, DIM)), 'conv_pw2_b': jnp.zeros((DIM,)),
            'ff2_ln_g': jnp.ones((DIM,)), 'ff2_ln_b': jnp.zeros((DIM,)),
            'ff2_w1': nrm((DIM, DIM * FF_MULT)), 'ff2_b1': jnp.zeros((DIM * FF_MULT,)),
            'ff2_w2': nrm((DIM * FF_MULT, DIM)), 'ff2_b2': jnp.zeros((DIM,)),
            'post_ln_g': jnp.ones((DIM,)), 'post_ln_b': jnp.zeros((DIM,)),
        })
    p['blocks'] = blocks
    return p


if __name__ == "__main__":
    key = jax.random.PRNGKey(0)
    kp, kx, ks = jax.random.split(key, 3)
    params = init_params(kp)
    codes = jax.random.randint(kx, (BATCH, ACOUSTIC_LEN * NUM_EFF_Q),
                               0, CODEBOOK_SIZE, dtype=jnp.int32)
    sem_codes = jax.random.randint(ks, (BATCH, SEM_LEN),
                                   0, NUM_CODES_WITH_MASK, dtype=jnp.int32)

    logits = jax.jit(conformer_wrapper_forward)(params, codes, sem_codes)
    logits = jax.block_until_ready(logits)
    assert logits.shape == (BATCH, ACOUSTIC_LEN * NUM_EFF_Q, CODEBOOK_SIZE)
    assert bool(jnp.all(jnp.isfinite(logits)))
    print("KERNEL_OK")
</pallas_src>

<mosaic_0001>
module attributes {stable_mosaic.version = 11 : i64} {
  func.func @_fused_forward_kernel(%arg0: i32, %arg1: memref<16x32xf32, #tpu.memory_space<vmem>>, %arg2: memref<16x64xf32, #tpu.memory_space<vmem>>, %arg3: memref<16x64xf32, #tpu.memory_space<vmem>>, %arg4: memref<64x64xbf16, #tpu.memory_space<vmem>>, %arg5: memref<32x32xf32, #tpu.memory_space<vmem>>, %arg6: memref<32x16xf32, #tpu.memory_space<vmem>>, %arg7: memref<1x32xf32, #tpu.memory_space<vmem>>, %arg8: memref<1x32xf32, #tpu.memory_space<vmem>>, %arg9: memref<1x32xf32, #tpu.memory_space<vmem>>, %arg10: memref<32x128xbf16, #tpu.memory_space<vmem>>, %arg11: memref<1x128xf32, #tpu.memory_space<vmem>>, %arg12: memref<128x32xbf16, #tpu.memory_space<vmem>>, %arg13: memref<1x32xf32, #tpu.memory_space<vmem>>, %arg14: memref<1x32xf32, #tpu.memory_space<vmem>>, %arg15: memref<1x32xf32, #tpu.memory_space<vmem>>, %arg16: memref<32x96xbf16, #tpu.memory_space<vmem>>, %arg17: memref<32x32xbf16, #tpu.memory_space<vmem>>, %arg18: memref<1x32xf32, #tpu.memory_space<vmem>>, %arg19: memref<1x32xf32, #tpu.memory_space<vmem>>, %arg20: memref<1x32xf32, #tpu.memory_space<vmem>>, %arg21: memref<32x128xbf16, #tpu.memory_space<vmem>>, %arg22: memref<1x128xf32, #tpu.memory_space<vmem>>, %arg23: memref<5x16x64xf32, #tpu.memory_space<vmem>>, %arg24: memref<1x64xf32, #tpu.memory_space<vmem>>, %arg25: memref<1x64xf32, #tpu.memory_space<vmem>>, %arg26: memref<64x32xbf16, #tpu.memory_space<vmem>>, %arg27: memref<1x32xf32, #tpu.memory_space<vmem>>, %arg28: memref<1x32xf32, #tpu.memory_space<vmem>>, %arg29: memref<1x32xf32, #tpu.memory_space<vmem>>, %arg30: memref<32x128xbf16, #tpu.memory_space<vmem>>, %arg31: memref<1x128xf32, #tpu.memory_space<vmem>>, %arg32: memref<128x32xbf16, #tpu.memory_space<vmem>>, %arg33: memref<1x32xf32, #tpu.memory_space<vmem>>, %arg34: memref<1x32xf32, #tpu.memory_space<vmem>>, %arg35: memref<1x32xf32, #tpu.memory_space<vmem>>, %arg36: memref<32x128xbf16, #tpu.memory_space<vmem>>, %arg37: memref<1x128xf32, #tpu.memory_space<vmem>>, %arg38: memref<1x128xf32, #tpu.memory_space<vmem>>, %arg39: memref<1x128xf32, #tpu.memory_space<vmem>>, %arg40: memref<128x128xf32, #tpu.memory_space<vmem>>, %arg41: memref<128x128xbf16, #tpu.memory_space<vmem>>, %arg42: memref<1x128xf32, #tpu.memory_space<vmem>>, %arg43: memref<16x128xf32, #tpu.memory_space<vmem>>) attributes {dimension_semantics = [#tpu.dimension_semantics<parallel>], iteration_bounds = array<i64: 1>, scalar_prefetch = 0 : i64, scratch_operands = 0 : i64, tpu.core_type = #tpu.core_type<tc>, window_params = [{transform_indices = @transform_0, window_bounds = array<i64: 16, 32>}, {pipeline_mode = #tpu.pipeline_mode<synchronous>, transform_indices = @transform_1, window_bounds = array<i64: 16, 64>}, {pipeline_mode = #tpu.pipeline_mode<synchronous>, transform_indices = @transform_2, window_bounds = array<i64: 16, 64>}, {pipeline_mode = #tpu.pipeline_mode<synchronous>, transform_indices = @transform_3, window_bounds = array<i64: 64, 64>}, {pipeline_mode = #tpu.pipeline_mode<synchronous>, transform_indices = @transform_4, window_bounds = array<i64: 32, 32>}, {pipeline_mode = #tpu.pipeline_mode<synchronous>, transform_indices = @transform_5, window_bounds = array<i64: 32, 16>}, {pipeline_mode = #tpu.pipeline_mode<synchronous>, transform_indices = @transform_6, window_bounds = array<i64: 1, 32>}, {pipeline_mode = #tpu.pipeline_mode<synchronous>, transform_indices = @transform_7, window_bounds = array<i64: 1, 32>}, {pipeline_mode = #tpu.pipeline_mode<synchronous>, transform_indices = @transform_8, window_bounds = array<i64: 1, 32>}, {pipeline_mode = #tpu.pipeline_mode<synchronous>, transform_indices = @transform_9, window_bounds = array<i64: 32, 128>}, {pipeline_mode = #tpu.pipeline_mode<synchronous>, transform_indices = @transform_10, window_bounds = array<i64: 1, 128>}, {pipeline_mode = #tpu.pipeline_mode<synchronous>, transform_indices = @transform_11, window_bounds = array<i64: 128, 32>}, {pipeline_mode = #tpu.pipeline_mode<synchronous>, transform_indices = @transform_12, window_bounds = array<i64: 1, 32>}, {pipeline_mode = #tpu.pipeline_mode<synchronous>, transform_indices = @transform_13, window_bounds = array<i64: 1, 32>}, {pipeline_mode = #tpu.pipeline_mode<synchronous>, transform_indices = @transform_14, window_bounds = array<i64: 1, 32>}, {pipeline_mode = #tpu.pipeline_mode<synchronous>, transform_indices = @transform_15, window_bounds = array<i64: 32, 96>}, {pipeline_mode = #tpu.pipeline_mode<synchronous>, transform_indices = @transform_16, window_bounds = array<i64: 32, 32>}, {pipeline_mode = #tpu.pipeline_mode<synchronous>, transform_indices = @transform_17, window_bounds = array<i64: 1, 32>}, {pipeline_mode = #tpu.pipeline_mode<synchronous>, transform_indices = @transform_18, window_bounds = array<i64: 1, 32>}, {pipeline_mode = #tpu.pipeline_mode<synchronous>, transform_indices = @transform_19, window_bounds = array<i64: 1, 32>}, {pipeline_mode = #tpu.pipeline_mode<synchronous>, transform_indices = @transform_20, window_bounds = array<i64: 32, 128>}, {pipeline_mode = #tpu.pipeline_mode<synchronous>, transform_indices = @transform_21, window_bounds = array<i64: 1, 128>}, {pipeline_mode = #tpu.pipeline_mode<synchronous>, transform_indices = @transform_22, window_bounds = array<i64: 5, 16, 64>}, {pipeline_mode = #tpu.pipeline_mode<synchronous>, transform_indices = @transform_23, window_bounds = array<i64: 1, 64>}, {pipeline_mode = #tpu.pipeline_mode<synchronous>, transform_indices = @transform_24, window_bounds = array<i64: 1, 64>}, {pipeline_mode = #tpu.pipeline_mode<synchronous>, transform_indices = @transform_25, window_bounds = array<i64: 64, 32>}, {pipeline_mode = #tpu.pipeline_mode<synchronous>, transform_indices = @transform_26, window_bounds = array<i64: 1, 32>}, {pipeline_mode = #tpu.pipeline_mode<synchronous>, transform_indices = @transform_27, window_bounds = array<i64: 1, 32>}, {pipeline_mode = #tpu.pipeline_mode<synchronous>, transform_indices = @transform_28, window_bounds = array<i64: 1, 32>}, {pipeline_mode = #tpu.pipeline_mode<synchronous>, transform_indices = @transform_29, window_bounds = array<i64: 32, 128>}, {pipeline_mode = #tpu.pipeline_mode<synchronous>, transform_indices = @transform_30, window_bounds = array<i64: 1, 128>}, {pipeline_mode = #tpu.pipeline_mode<synchronous>, transform_indices = @transform_31, window_bounds = array<i64: 128, 32>}, {pipeline_mode = #tpu.pipeline_mode<synchronous>, transform_indices = @transform_32, window_bounds = array<i64: 1, 32>}, {pipeline_mode = #tpu.pipeline_mode<synchronous>, transform_indices = @transform_33, window_bounds = array<i64: 1, 32>}, {pipeline_mode = #tpu.pipeline_mode<synchronous>, transform_indices = @transform_34, window_bounds = array<i64: 1, 32>}, {pipeline_mode = #tpu.pipeline_mode<synchronous>, transform_indices = @transform_35, window_bounds = array<i64: 32, 128>}, {pipeline_mode = #tpu.pipeline_mode<synchronous>, transform_indices = @transform_36, window_bounds = array<i64: 1, 128>}, {pipeline_mode = #tpu.pipeline_mode<synchronous>, transform_indices = @transform_37, window_bounds = array<i64: 1, 128>}, {pipeline_mode = #tpu.pipeline_mode<synchronous>, transform_indices = @transform_38, window_bounds = array<i64: 1, 128>}, {pipeline_mode = #tpu.pipeline_mode<synchronous>, transform_indices = @transform_39, window_bounds = array<i64: 128, 128>}, {pipeline_mode = #tpu.pipeline_mode<synchronous>, transform_indices = @transform_40, window_bounds = array<i64: 128, 128>}, {pipeline_mode = #tpu.pipeline_mode<synchronous>, transform_indices = @transform_41, window_bounds = array<i64: 1, 128>}, {transform_indices = @transform_42, window_bounds = array<i64: 16, 128>}]} {
    %c0 = arith.constant 0 : index
    %c0_0 = arith.constant 0 : index
    %0 = vector.load %arg1[%c0, %c0_0] : memref<16x32xf32, #tpu.memory_space<vmem>>, vector<16x32xf32>
    %c0_1 = arith.constant 0 : index
    %c0_2 = arith.constant 0 : index
    %1 = vector.load %arg2[%c0_1, %c0_2] : memref<16x64xf32, #tpu.memory_space<vmem>>, vector<16x64xf32>
    %c0_3 = arith.constant 0 : index
    %c0_4 = arith.constant 0 : index
    %2 = vector.load %arg3[%c0_3, %c0_4] : memref<16x64xf32, #tpu.memory_space<vmem>>, vector<16x64xf32>
    %c0_5 = arith.constant 0 : index
    %c0_6 = arith.constant 0 : index
    %3 = vector.load %arg4[%c0_5, %c0_6] : memref<64x64xbf16, #tpu.memory_space<vmem>>, vector<64x64xbf16>
    %c0_7 = arith.constant 0 : index
    %c0_8 = arith.constant 0 : index
    %4 = vector.load %arg5[%c0_7, %c0_8] : memref<32x32xf32, #tpu.memory_space<vmem>>, vector<32x32xf32>
    %c0_9 = arith.constant 0 : index
    %c0_10 = arith.constant 0 : index
    %5 = vector.load %arg6[%c0_9, %c0_10] : memref<32x16xf32, #tpu.memory_space<vmem>>, vector<32x16xf32>
    %c0_11 = arith.constant 0 : index
    %c0_12 = arith.constant 0 : index
    %6 = vector.load %arg7[%c0_11, %c0_12] : memref<1x32xf32, #tpu.memory_space<vmem>>, vector<1x32xf32>
    %c0_13 = arith.constant 0 : index
    %c0_14 = arith.constant 0 : index
    %7 = vector.load %arg8[%c0_13, %c0_14] : memref<1x32xf32, #tpu.memory_space<vmem>>, vector<1x32xf32>
    %c0_15 = arith.constant 0 : index
    %c0_16 = arith.constant 0 : index
    %8 = vector.load %arg9[%c0_15, %c0_16] : memref<1x32xf32, #tpu.memory_space<vmem>>, vector<1x32xf32>
    %cst = arith.constant dense<0.000000e+00> : vector<16xf32>
    %9 = vector.multi_reduction <add>, %0, %cst [1] : vector<16x32xf32> to vector<16xf32>
    %10 = vector.shape_cast %9 : vector<16xf32> to vector<16x1xf32>
    %cst_17 = arith.constant 3.200000e+01 : f32
    %11 = vector.broadcast %cst_17 : f32 to vector<16x1xf32>
    %12 = arith.divf %10, %11 : vector<16x1xf32>
    %13 = vector.broadcast %12 : vector<16x1xf32> to vector<16x32xf32>
    %14 = arith.subf %0, %13 : vector<16x32xf32>
    %15 = arith.mulf %14, %14 : vector<16x32xf32>
    %cst_18 = arith.constant dense<0.000000e+00> : vector<16xf32>
    %16 = vector.multi_reduction <add>, %15, %cst_18 [1] : vector<16x32xf32> to vector<16xf32>
    %17 = vector.shape_cast %16 : vector<16xf32> to vector<16x1xf32>
    %cst_19 = arith.constant 3.200000e+01 : f32
    %18 = vector.broadcast %cst_19 : f32 to vector<16x1xf32>
    %19 = arith.divf %17, %18 : vector<16x1xf32>
    %20 = vector.broadcast %12 : vector<16x1xf32> to vector<16x32xf32>
    %21 = arith.subf %0, %20 : vector<16x32xf32>
    %cst_20 = arith.constant 9.99999974E-6 : f32
    %22 = vector.broadcast %cst_20 : f32 to vector<16x1xf32>
    %23 = arith.addf %19, %22 : vector<16x1xf32>
    %24 = math.rsqrt %23 : vector<16x1xf32>
    %25 = vector.broadcast %24 : vector<16x1xf32> to vector<16x32xf32>
    %26 = arith.mulf %21, %25 : vector<16x32xf32>
    %27 = vector.broadcast %7 : vector<1x32xf32> to vector<16x32xf32>
    %28 = arith.mulf %26, %27 : vector<16x32xf32>
    %29 = vector.broadcast %8 : vector<1x32xf32> to vector<16x32xf32>
    %30 = arith.addf %28, %29 : vector<16x32xf32>
    %c0_21 = arith.constant 0 : index
    %c0_22 = arith.constant 0 : index
    %31 = vector.load %arg10[%c0_21, %c0_22] : memref<32x128xbf16, #tpu.memory_space<vmem>>, vector<32x128xbf16>
    %32 = arith.truncf %30 : vector<16x32xf32> to vector<16x32xbf16>
    %cst_23 = arith.constant dense<0.000000e+00> : vector<16x128xf32>
    %33 = tpu.matmul %32, %31, %cst_23 {dimension_numbers = #tpu.dot_dimension_numbers<[1], [0], [0], [1], [0, 0, 1, 1], [], []>} : vector<16x32xbf16>, vector<32x128xbf16>, vector<16x128xf32> -> vector<16x128xf32>
    %c0_24 = arith.constant 0 : index
    %c0_25 = arith.constant 0 : index
    %34 = vector.load %arg11[%c0_24, %c0_25] : memref<1x128xf32, #tpu.memory_space<vmem>>, vector<1x128xf32>
    %35 = vector.broadcast %34 : vector<1x128xf32> to vector<16x128xf32>
    %36 = arith.addf %33, %35 : vector<16x128xf32>
    %cst_26 = arith.constant 0.000000e+00 : f32
    %37 = vector.broadcast %cst_26 : f32 to vector<16x128xf32>
    %38 = arith.subf %37, %36 : vector<16x128xf32>
    %39 = math.exp %38 : vector<16x128xf32>
    %cst_27 = arith.constant 1.000000e+00 : f32
    %40 = vector.broadcast %cst_27 : f32 to vector<16x128xf32>
    %41 = arith.addf %40, %39 : vector<16x128xf32>
    %42 = tpu.reciprocal %41 {approx = true} : vector<16x128xf32> -> vector<16x128xf32>
    %43 = arith.mulf %36, %42 : vector<16x128xf32>
    %c0_28 = arith.constant 0 : index
    %c0_29 = arith.constant 0 : index
    %44 = vector.load %arg12[%c0_28, %c0_29] : memref<128x32xbf16, #tpu.memory_space<vmem>>, vector<128x32xbf16>
    %45 = arith.truncf %43 : vector<16x128xf32> to vector<16x128xbf16>
    %cst_30 = arith.constant dense<0.000000e+00> : vector<16x32xf32>
    %46 = tpu.matmul %45, %44, %cst_30 {dimension_numbers = #tpu.dot_dimension_numbers<[1], [0], [0], [1], [0, 0, 1, 1], [], []>} : vector<16x128xbf16>, vector<128x32xbf16>, vector<16x32xf32> -> vector<16x32xf32>
    %c0_31 = arith.constant 0 : index
    %c0_32 = arith.constant 0 : index
    %47 = vector.load %arg13[%c0_31, %c0_32] : memref<1x32xf32, #tpu.memory_space<vmem>>, vector<1x32xf32>
    %48 = vector.broadcast %47 : vector<1x32xf32> to vector<16x32xf32>
    %49 = arith.addf %46, %48 : vector<16x32xf32>
    %cst_33 = arith.constant 5.000000e-01 : f32
    %50 = vector.broadcast %cst_33 : f32 to vector<16x32xf32>
    %51 = arith.mulf %50, %49 : vector<16x32xf32>
    %52 = arith.addf %51, %0 : vector<16x32xf32>
    %c0_34 = arith.constant 0 : index
    %c0_35 = arith.constant 0 : index
    %53 = vector.load %arg14[%c0_34, %c0_35] : memref<1x32xf32, #tpu.memory_space<vmem>>, vector<1x32xf32>
    %c0_36 = arith.constant 0 : index
    %c0_37 = arith.constant 0 : index
    %54 = vector.load %arg15[%c0_36, %c0_37] : memref<1x32xf32, #tpu.memory_space<vmem>>, vector<1x32xf32>
    %cst_38 = arith.constant dense<0.000000e+00> : vector<16xf32>
    %55 = vector.multi_reduction <add>, %52, %cst_38 [1] : vector<16x32xf32> to vector<16xf32>
    %56 = vector.shape_cast %55 : vector<16xf32> to vector<16x1xf32>
    %cst_39 = arith.constant 3.200000e+01 : f32
    %57 = vector.broadcast %cst_39 : f32 to vector<16x1xf32>
    %58 = arith.divf %56, %57 : vector<16x1xf32>
    %59 = vector.broadcast %58 : vector<16x1xf32> to vector<16x32xf32>
    %60 = arith.subf %52, %59 : vector<16x32xf32>
    %61 = arith.mulf %60, %60 : vector<16x32xf32>
    %cst_40 = arith.constant dense<0.000000e+00> : vector<16xf32>
    %62 = vector.multi_reduction <add>, %61, %cst_40 [1] : vector<16x32xf32> to vector<16xf32>
    %63 = vector.shape_cast %62 : vector<16xf32> to vector<16x1xf32>
    %cst_41 = arith.constant 3.200000e+01 : f32
    %64 = vector.broadcast %cst_41 : f32 to vector<16x1xf32>
    %65 = arith.divf %63, %64 : vector<16x1xf32>
    %66 = vector.broadcast %58 : vector<16x1xf32> to vector<16x32xf32>
    %67 = arith.subf %52, %66 : vector<16x32xf32>
    %cst_42 = arith.constant 9.99999974E-6 : f32
    %68 = vector.broadcast %cst_42 : f32 to vector<16x1xf32>
    %69 = arith.addf %65, %68 : vector<16x1xf32>
    %70 = math.rsqrt %69 : vector<16x1xf32>
    %71 = vector.broadcast %70 : vector<16x1xf32> to vector<16x32xf32>
    %72 = arith.mulf %67, %71 : vector<16x32xf32>
    %73 = vector.broadcast %53 : vector<1x32xf32> to vector<16x32xf32>
    %74 = arith.mulf %72, %73 : vector<16x32xf32>
    %75 = vector.broadcast %54 : vector<1x32xf32> to vector<16x32xf32>
    %76 = arith.addf %74, %75 : vector<16x32xf32>
    %c0_43 = arith.constant 0 : index
    %c0_44 = arith.constant 0 : index
    %77 = vector.load %arg16[%c0_43, %c0_44] : memref<32x96xbf16, #tpu.memory_space<vmem>>, vector<32x96xbf16>
    %78 = arith.truncf %76 : vector<16x32xf32> to vector<16x32xbf16>
    %cst_45 = arith.constant dense<0.000000e+00> : vector<16x96xf32>
    %79 = tpu.matmul %78, %77, %cst_45 {dimension_numbers = #tpu.dot_dimension_numbers<[1], [0], [0], [1], [0, 0, 1, 1], [], []>} : vector<16x32xbf16>, vector<32x96xbf16>, vector<16x96xf32> -> vector<16x96xf32>
    %80 = vector.extract_strided_slice %79 {offsets = [0, 0], sizes = [16, 64], strides = [1, 1]} : vector<16x96xf32> to vector<16x64xf32>
    %81 = vector.extract_strided_slice %79 {offsets = [0, 64], sizes = [16, 32], strides = [1, 1]} : vector<16x96xf32> to vector<16x32xf32>
    %82 = arith.mulf %80, %1 : vector<16x64xf32>
    %83 = arith.truncf %80 : vector<16x64xf32> to vector<16x64xbf16>
    %cst_46 = arith.constant dense<0.000000e+00> : vector<16x64xf32>
    %84 = tpu.matmul %83, %3, %cst_46 {dimension_numbers = #tpu.dot_dimension_numbers<[1], [0], [0], [1], [0, 0, 1, 1], [], []>} : vector<16x64xbf16>, vector<64x64xbf16>, vector<16x64xf32> -> vector<16x64xf32>
    %85 = arith.mulf %84, %2 : vector<16x64xf32>
    %86 = arith.addf %82, %85 : vector<16x64xf32>
    %87 = vector.extract_strided_slice %86 {offsets = [0, 0], sizes = [16, 32], strides = [1, 1]} : vector<16x64xf32> to vector<16x32xf32>
    %88 = vector.extract_strided_slice %86 {offsets = [0, 32], sizes = [16, 32], strides = [1, 1]} : vector<16x64xf32> to vector<16x32xf32>
    %89 = tpu.concatenate %87, %87 in 0 : vector<16x32xf32>, vector<16x32xf32> -> vector<32x32xf32>
    %90 = arith.mulf %89, %4 : vector<32x32xf32>
    %91 = arith.truncf %90 : vector<32x32xf32> to vector<32x32xbf16>
    %92 = arith.truncf %88 : vector<16x32xf32> to vector<16x32xbf16>
    %cst_47 = arith.constant dense<0.000000e+00> : vector<32x16xf32>
    %93 = tpu.matmul %91, %92, %cst_47 {dimension_numbers = #tpu.dot_dimension_numbers<[1], [1], [0], [0], [0, 0, 1, 0], [], []>} : vector<32x32xbf16>, vector<16x32xbf16>, vector<32x16xf32> -> vector<32x16xf32>
    %cst_48 = arith.constant 2.500000e-01 : f32
    %94 = vector.broadcast %cst_48 : f32 to vector<32x16xf32>
    %95 = arith.mulf %93, %94 : vector<32x16xf32>
    %96 = arith.addf %95, %5 : vector<32x16xf32>
    %cst_49 = arith.constant dense<0xFF800000> : vector<32xf32>
    %97 = vector.multi_reduction <maximumf>, %96, %cst_49 [1] : vector<32x16xf32> to vector<32xf32>
    %98 = vector.shape_cast %97 : vector<32xf32> to vector<32x1xf32>
    %99 = vector.broadcast %98 : vector<32x1xf32> to vector<32x16xf32>
    %100 = arith.subf %96, %99 : vector<32x16xf32>
    %101 = math.exp %100 : vector<32x16xf32>
    %cst_50 = arith.constant dense<0.000000e+00> : vector<32xf32>
    %102 = vector.multi_reduction <add>, %101, %cst_50 [1] : vector<32x16xf32> to vector<32xf32>
    %103 = vector.shape_cast %102 : vector<32xf32> to vector<32x1xf32>
    %104 = tpu.reciprocal %103 {approx = true} : vector<32x1xf32> -> vector<32x1xf32>
    %105 = vector.broadcast %104 : vector<32x1xf32> to vector<32x16xf32>
    %106 = arith.mulf %101, %105 : vector<32x16xf32>
    %107 = arith.truncf %106 : vector<32x16xf32> to vector<32x16xbf16>
    %108 = arith.truncf %81 : vector<16x32xf32> to vector<16x32xbf16>
    %cst_51 = arith.constant dense<0.000000e+00> : vector<32x32xf32>
    %109 = tpu.matmul %107, %108, %cst_51 {dimension_numbers = #tpu.dot_dimension_numbers<[1], [0], [0], [1], [0, 0, 1, 1], [], []>} : vector<32x16xbf16>, vector<16x32xbf16>, vector<32x32xf32> -> vector<32x32xf32>
    %110 = vector.extract_strided_slice %109 {offsets = [0, 0], sizes = [16, 32], strides = [1, 1]} : vector<32x32xf32> to vector<16x32xf32>
    %111 = vector.broadcast %6 : vector<1x32xf32> to vector<16x32xf32>
    %112 = arith.mulf %110, %111 : vector<16x32xf32>
    %113 = vector.extract_strided_slice %109 {offsets = [16, 0], sizes = [16, 32], strides = [1, 1]} : vector<32x32xf32> to vector<16x32xf32>
    %cst_52 = arith.constant 1.000000e+00 : f32
    %114 = vector.broadcast %cst_52 : f32 to vector<1x32xf32>
    %115 = arith.subf %114, %6 : vector<1x32xf32>
    %116 = vector.broadcast %115 : vector<1x32xf32> to vector<16x32xf32>
    %117 = arith.mulf %113, %116 : vector<16x32xf32>
    %118 = arith.addf %112, %117 : vector<16x32xf32>
    %c0_53 = arith.constant 0 : index
    %c0_54 = arith.constant 0 : index
    %119 = vector.load %arg17[%c0_53, %c0_54] : memref<32x32xbf16, #tpu.memory_space<vmem>>, vector<32x32xbf16>
    %120 = arith.truncf %118 : vector<16x32xf32> to vector<16x32xbf16>
    %cst_55 = arith.constant dense<0.000000e+00> : vector<16x32xf32>
    %121 = tpu.matmul %120, %119, %cst_55 {dimension_numbers = #tpu.dot_dimension_numbers<[1], [0], [0], [1], [0, 0, 1, 1], [], []>} : vector<16x32xbf16>, vector<32x32xbf16>, vector<16x32xf32> -> vector<16x32xf32>
    %c0_56 = arith.constant 0 : index
    %c0_57 = arith.constant 0 : index
    %122 = vector.load %arg18[%c0_56, %c0_57] : memref<1x32xf32, #tpu.memory_space<vmem>>, vector<1x32xf32>
    %123 = vector.broadcast %122 : vector<1x32xf32> to vector<16x32xf32>
    %124 = arith.addf %121, %123 : vector<16x32xf32>
    %125 = arith.addf %124, %52 : vector<16x32xf32>
    %c0_58 = arith.constant 0 : index
    %c0_59 = arith.constant 0 : index
    %126 = vector.load %arg19[%c0_58, %c0_59] : memref<1x32xf32, #tpu.memory_space<vmem>>, vector<1x32xf32>
    %c0_60 = arith.constant 0 : index
    %c0_61 = arith.constant 0 : index
    %127 = vector.load %arg20[%c0_60, %c0_61] : memref<1x32xf32, #tpu.memory_space<vmem>>, vector<1x32xf32>
    %cst_62 = arith.constant dense<0.000000e+00> : vector<16xf32>
    %128 = vector.multi_reduction <add>, %125, %cst_62 [1] : vector<16x32xf32> to vector<16xf32>
    %129 = vector.shape_cast %128 : vector<16xf32> to vector<16x1xf32>
    %cst_63 = arith.constant 3.200000e+01 : f32
    %130 = vector.broadcast %cst_63 : f32 to vector<16x1xf32>
    %131 = arith.divf %129, %130 : vector<16x1xf32>
    %132 = vector.broadcast %131 : vector<16x1xf32> to vector<16x32xf32>
    %133 = arith.subf %125, %132 : vector<16x32xf32>
    %134 = arith.mulf %133, %133 : vector<16x32xf32>
    %cst_64 = arith.constant dense<0.000000e+00> : vector<16xf32>
    %135 = vector.multi_reduction <add>, %134, %cst_64 [1] : vector<16x32xf32> to vector<16xf32>
    %136 = vector.shape_cast %135 : vector<16xf32> to vector<16x1xf32>
    %cst_65 = arith.constant 3.200000e+01 : f32
    %137 = vector.broadcast %cst_65 : f32 to vector<16x1xf32>
    %138 = arith.divf %136, %137 : vector<16x1xf32>
    %139 = vector.broadcast %131 : vector<16x1xf32> to vector<16x32xf32>
    %140 = arith.subf %125, %139 : vector<16x32xf32>
    %cst_66 = arith.constant 9.99999974E-6 : f32
    %141 = vector.broadcast %cst_66 : f32 to vector<16x1xf32>
    %142 = arith.addf %138, %141 : vector<16x1xf32>
    %143 = math.rsqrt %142 : vector<16x1xf32>
    %144 = vector.broadcast %143 : vector<16x1xf32> to vector<16x32xf32>
    %145 = arith.mulf %140, %144 : vector<16x32xf32>
    %146 = vector.broadcast %126 : vector<1x32xf32> to vector<16x32xf32>
    %147 = arith.mulf %145, %146 : vector<16x32xf32>
    %148 = vector.broadcast %127 : vector<1x32xf32> to vector<16x32xf32>
    %149 = arith.addf %147, %148 : vector<16x32xf32>
    %c0_67 = arith.constant 0 : index
    %c0_68 = arith.constant 0 : index
    %150 = vector.load %arg21[%c0_67, %c0_68] : memref<32x128xbf16, #tpu.memory_space<vmem>>, vector<32x128xbf16>
    %151 = arith.truncf %149 : vector<16x32xf32> to vector<16x32xbf16>
    %cst_69 = arith.constant dense<0.000000e+00> : vector<16x128xf32>
    %152 = tpu.matmul %151, %150, %cst_69 {dimension_numbers = #tpu.dot_dimension_numbers<[1], [0], [0], [1], [0, 0, 1, 1], [], []>} : vector<16x32xbf16>, vector<32x128xbf16>, vector<16x128xf32> -> vector<16x128xf32>
    %c0_70 = arith.constant 0 : index
    %c0_71 = arith.constant 0 : index
    %153 = vector.load %arg22[%c0_70, %c0_71] : memref<1x128xf32, #tpu.memory_space<vmem>>, vector<1x128xf32>
    %154 = vector.broadcast %153 : vector<1x128xf32> to vector<16x128xf32>
    %155 = arith.addf %152, %154 : vector<16x128xf32>
    %156 = vector.extract_strided_slice %155 {offsets = [0, 0], sizes = [16, 64], strides = [1, 1]} : vector<16x128xf32> to vector<16x64xf32>
    %157 = vector.extract_strided_slice %155 {offsets = [0, 64], sizes = [16, 64], strides = [1, 1]} : vector<16x128xf32> to vector<16x64xf32>
    %cst_72 = arith.constant 0.000000e+00 : f32
    %158 = vector.broadcast %cst_72 : f32 to vector<16x64xf32>
    %159 = arith.subf %158, %157 : vector<16x64xf32>
    %160 = math.exp %159 : vector<16x64xf32>
    %cst_73 = arith.constant 1.000000e+00 : f32
    %161 = vector.broadcast %cst_73 : f32 to vector<16x64xf32>
    %162 = arith.addf %161, %160 : vector<16x64xf32>
    %163 = tpu.reciprocal %162 {approx = true} : vector<16x64xf32> -> vector<16x64xf32>
    %164 = arith.mulf %156, %163 : vector<16x64xf32>
    %c0_74 = arith.constant 0 : index
    %c0_75 = arith.constant 0 : index
    %165 = vector.load %arg24[%c0_74, %c0_75] : memref<1x64xf32, #tpu.memory_space<vmem>>, vector<1x64xf32>
    %cst_76 = arith.constant 0.000000e+00 : f32
    %166 = vector.broadcast %cst_76 : f32 to vector<16x64xf32>
    %167 = vector.broadcast %165 : vector<1x64xf32> to vector<16x64xf32>
    %168 = arith.addf %167, %166 : vector<16x64xf32>
    %c2_i32 = arith.constant 2 : i32
    %169 = tpu.dynamic_rotate %164 by %c2_i32 dim 0 : vector<16x64xf32>, i32 -> vector<16x64xf32>
    %c0_77 = arith.constant 0 : index
    %c0_78 = arith.constant 0 : index
    %c0_79 = arith.constant 0 : index
    %170 = vector.load %arg23[%c0_77, %c0_78, %c0_79] : memref<5x16x64xf32, #tpu.memory_space<vmem>>, vector<1x16x64xf32>
    %171 = vector.shape_cast %170 : vector<1x16x64xf32> to vector<16x64xf32>
    %172 = arith.mulf %169, %171 : vector<16x64xf32>
    %173 = arith.addf %168, %172 : vector<16x64xf32>
    %c1_i32 = arith.constant 1 : i32
    %174 = tpu.dynamic_rotate %164 by %c1_i32 dim 0 : vector<16x64xf32>, i32 -> vector<16x64xf32>
    %c1 = arith.constant 1 : index
    %c0_80 = arith.constant 0 : index
    %c0_81 = arith.constant 0 : index
    %175 = vector.load %arg23[%c1, %c0_80, %c0_81] : memref<5x16x64xf32, #tpu.memory_space<vmem>>, vector<1x16x64xf32>
    %176 = vector.shape_cast %175 : vector<1x16x64xf32> to vector<16x64xf32>
    %177 = arith.mulf %174, %176 : vector<16x64xf32>
    %178 = arith.addf %173, %177 : vector<16x64xf32>
    %c2 = arith.constant 2 : index
    %c0_82 = arith.constant 0 : index
    %c0_83 = arith.constant 0 : index
    %179 = vector.load %arg23[%c2, %c0_82, %c0_83] : memref<5x16x64xf32, #tpu.memory_space<vmem>>, vector<1x16x64xf32>
    %180 = vector.shape_cast %179 : vector<1x16x64xf32> to vector<16x64xf32>
    %181 = arith.mulf %164, %180 : vector<16x64xf32>
    %182 = arith.addf %178, %181 : vector<16x64xf32>
    %c15_i32 = arith.constant 15 : i32
    %183 = tpu.dynamic_rotate %164 by %c15_i32 dim 0 : vector<16x64xf32>, i32 -> vector<16x64xf32>
    %c3 = arith.constant 3 : index
    %c0_84 = arith.constant 0 : index
    %c0_85 = arith.constant 0 : index
    %184 = vector.load %arg23[%c3, %c0_84, %c0_85] : memref<5x16x64xf32, #tpu.memory_space<vmem>>, vector<1x16x64xf32>
    %185 = vector.shape_cast %184 : vector<1x16x64xf32> to vector<16x64xf32>
    %186 = arith.mulf %183, %185 : vector<16x64xf32>
    %187 = arith.addf %182, %186 : vector<16x64xf32>
    %c14_i32 = arith.constant 14 : i32
    %188 = tpu.dynamic_rotate %164 by %c14_i32 dim 0 : vector<16x64xf32>, i32 -> vector<16x64xf32>
    %c4 = arith.constant 4 : index
    %c0_86 = arith.constant 0 : index
    %c0_87 = arith.constant 0 : index
    %189 = vector.load %arg23[%c4, %c0_86, %c0_87] : memref<5x16x64xf32, #tpu.memory_space<vmem>>, vector<1x16x64xf32>
    %190 = vector.shape_cast %189 : vector<1x16x64xf32> to vector<16x64xf32>
    %191 = arith.mulf %188, %190 : vector<16x64xf32>
    %192 = arith.addf %187, %191 : vector<16x64xf32>
    %cst_88 = arith.constant 0.000000e+00 : f32
    %193 = vector.broadcast %cst_88 : f32 to vector<16x64xf32>
    %194 = arith.subf %193, %192 : vector<16x64xf32>
    %195 = math.exp %194 : vector<16x64xf32>
    %cst_89 = arith.constant 1.000000e+00 : f32
    %196 = vector.broadcast %cst_89 : f32 to vector<16x64xf32>
    %197 = arith.addf %196, %195 : vector<16x64xf32>
    %198 = tpu.reciprocal %197 {approx = true} : vector<16x64xf32> -> vector<16x64xf32>
    %199 = arith.mulf %192, %198 : vector<16x64xf32>
    %cst_90 = arith.constant dense<0.000000e+00> : vector<16xf32>
    %200 = vector.multi_reduction <add>, %199, %cst_90 [1] : vector<16x64xf32> to vector<16xf32>
    %201 = vector.shape_cast %200 : vector<16xf32> to vector<16x1xf32>
    %cst_91 = arith.constant 6.400000e+01 : f32
    %202 = vector.broadcast %cst_91 : f32 to vector<16x1xf32>
    %203 = arith.divf %201, %202 : vector<16x1xf32>
    %204 = vector.broadcast %203 : vector<16x1xf32> to vector<16x64xf32>
    %205 = arith.subf %199, %204 : vector<16x64xf32>
    %206 = arith.mulf %205, %205 : vector<16x64xf32>
    %cst_92 = arith.constant dense<0.000000e+00> : vector<16xf32>
    %207 = vector.multi_reduction <add>, %206, %cst_92 [1] : vector<16x64xf32> to vector<16xf32>
    %208 = vector.shape_cast %207 : vector<16xf32> to vector<16x1xf32>
    %cst_93 = arith.constant 6.400000e+01 : f32
    %209 = vector.broadcast %cst_93 : f32 to vector<16x1xf32>
    %210 = arith.divf %208, %209 : vector<16x1xf32>
    %211 = vector.broadcast %203 : vector<16x1xf32> to vector<16x64xf32>
    %212 = arith.subf %199, %211 : vector<16x64xf32>
    %cst_94 = arith.constant 9.99999997E-7 : f32
    %213 = vector.broadcast %cst_94 : f32 to vector<16x1xf32>
    %214 = arith.maximumf %210, %213 : vector<16x1xf32>
    %215 = math.rsqrt %214 : vector<16x1xf32>
    %216 = vector.broadcast %215 : vector<16x1xf32> to vector<16x64xf32>
    %217 = arith.mulf %212, %216 : vector<16x64xf32>
    %c0_95 = arith.constant 0 : index
    %c0_96 = arith.constant 0 : index
    %218 = vector.load %arg25[%c0_95, %c0_96] : memref<1x64xf32, #tpu.memory_space<vmem>>, vector<1x64xf32>
    %219 = vector.broadcast %218 : vector<1x64xf32> to vector<16x64xf32>
    %220 = arith.mulf %217, %219 : vector<16x64xf32>
    %c0_97 = arith.constant 0 : index
    %c0_98 = arith.constant 0 : index
    %221 = vector.load %arg26[%c0_97, %c0_98] : memref<64x32xbf16, #tpu.memory_space<vmem>>, vector<64x32xbf16>
    %222 = arith.truncf %220 : vector<16x64xf32> to vector<16x64xbf16>
    %cst_99 = arith.constant dense<0.000000e+00> : vector<16x32xf32>
    %223 = tpu.matmul %222, %221, %cst_99 {dimension_numbers = #tpu.dot_dimension_numbers<[1], [0], [0], [1], [0, 0, 1, 1], [], []>} : vector<16x64xbf16>, vector<64x32xbf16>, vector<16x32xf32> -> vector<16x32xf32>
    %c0_100 = arith.constant 0 : index
    %c0_101 = arith.constant 0 : index
    %224 = vector.load %arg27[%c0_100, %c0_101] : memref<1x32xf32, #tpu.memory_space<vmem>>, vector<1x32xf32>
    %225 = vector.broadcast %224 : vector<1x32xf32> to vector<16x32xf32>
    %226 = arith.addf %223, %225 : vector<16x32xf32>
    %227 = arith.addf %226, %125 : vector<16x32xf32>
    %c0_102 = arith.constant 0 : index
    %c0_103 = arith.constant 0 : index
    %228 = vector.load %arg28[%c0_102, %c0_103] : memref<1x32xf32, #tpu.memory_space<vmem>>, vector<1x32xf32>
    %c0_104 = arith.constant 0 : index
    %c0_105 = arith.constant 0 : index
    %229 = vector.load %arg29[%c0_104, %c0_105] : memref<1x32xf32, #tpu.memory_space<vmem>>, vector<1x32xf32>
    %cst_106 = arith.constant dense<0.000000e+00> : vector<16xf32>
    %230 = vector.multi_reduction <add>, %227, %cst_106 [1] : vector<16x32xf32> to vector<16xf32>
    %231 = vector.shape_cast %230 : vector<16xf32> to vector<16x1xf32>
    %cst_107 = arith.constant 3.200000e+01 : f32
    %232 = vector.broadcast %cst_107 : f32 to vector<16x1xf32>
    %233 = arith.divf %231, %232 : vector<16x1xf32>
    %234 = vector.broadcast %233 : vector<16x1xf32> to vector<16x32xf32>
    %235 = arith.subf %227, %234 : vector<16x32xf32>
    %236 = arith.mulf %235, %235 : vector<16x32xf32>
    %cst_108 = arith.constant dense<0.000000e+00> : vector<16xf32>
    %237 = vector.multi_reduction <add>, %236, %cst_108 [1] : vector<16x32xf32> to vector<16xf32>
    %238 = vector.shape_cast %237 : vector<16xf32> to vector<16x1xf32>
    %cst_109 = arith.constant 3.200000e+01 : f32
    %239 = vector.broadcast %cst_109 : f32 to vector<16x1xf32>
    %240 = arith.divf %238, %239 : vector<16x1xf32>
    %241 = vector.broadcast %233 : vector<16x1xf32> to vector<16x32xf32>
    %242 = arith.subf %227, %241 : vector<16x32xf32>
    %cst_110 = arith.constant 9.99999974E-6 : f32
    %243 = vector.broadcast %cst_110 : f32 to vector<16x1xf32>
    %244 = arith.addf %240, %243 : vector<16x1xf32>
    %245 = math.rsqrt %244 : vector<16x1xf32>
    %246 = vector.broadcast %245 : vector<16x1xf32> to vector<16x32xf32>
    %247 = arith.mulf %242, %246 : vector<16x32xf32>
    %248 = vector.broadcast %228 : vector<1x32xf32> to vector<16x32xf32>
    %249 = arith.mulf %247, %248 : vector<16x32xf32>
    %250 = vector.broadcast %229 : vector<1x32xf32> to vector<16x32xf32>
    %251 = arith.addf %249, %250 : vector<16x32xf32>
    %c0_111 = arith.constant 0 : index
    %c0_112 = arith.constant 0 : index
    %252 = vector.load %arg30[%c0_111, %c0_112] : memref<32x128xbf16, #tpu.memory_space<vmem>>, vector<32x128xbf16>
    %253 = arith.truncf %251 : vector<16x32xf32> to vector<16x32xbf16>
    %cst_113 = arith.constant dense<0.000000e+00> : vector<16x128xf32>
    %254 = tpu.matmul %253, %252, %cst_113 {dimension_numbers = #tpu.dot_dimension_numbers<[1], [0], [0], [1], [0, 0, 1, 1], [], []>} : vector<16x32xbf16>, vector<32x128xbf16>, vector<16x128xf32> -> vector<16x128xf32>
    %c0_114 = arith.constant 0 : index
    %c0_115 = arith.constant 0 : index
    %255 = vector.load %arg31[%c0_114, %c0_115] : memref<1x128xf32, #tpu.memory_space<vmem>>, vector<1x128xf32>
    %256 = vector.broadcast %255 : vector<1x128xf32> to vector<16x128xf32>
    %257 = arith.addf %254, %256 : vector<16x128xf32>
    %cst_116 = arith.constant 0.000000e+00 : f32
    %258 = vector.broadcast %cst_116 : f32 to vector<16x128xf32>
    %259 = arith.subf %258, %257 : vector<16x128xf32>
    %260 = math.exp %259 : vector<16x128xf32>
    %cst_117 = arith.constant 1.000000e+00 : f32
    %261 = vector.broadcast %cst_117 : f32 to vector<16x128xf32>
    %262 = arith.addf %261, %260 : vector<16x128xf32>
    %263 = tpu.reciprocal %262 {approx = true} : vector<16x128xf32> -> vector<16x128xf32>
    %264 = arith.mulf %257, %263 : vector<16x128xf32>
    %c0_118 = arith.constant 0 : index
    %c0_119 = arith.constant 0 : index
    %265 = vector.load %arg32[%c0_118, %c0_119] : memref<128x32xbf16, #tpu.memory_space<vmem>>, vector<128x32xbf16>
    %266 = arith.truncf %264 : vector<16x128xf32> to vector<16x128xbf16>
    %cst_120 = arith.constant dense<0.000000e+00> : vector<16x32xf32>
    %267 = tpu.matmul %266, %265, %cst_120 {dimension_numbers = #tpu.dot_dimension_numbers<[1], [0], [0], [1], [0, 0, 1, 1], [], []>} : vector<16x128xbf16>, vector<128x32xbf16>, vector<16x32xf32> -> vector<16x32xf32>
    %c0_121 = arith.constant 0 : index
    %c0_122 = arith.constant 0 : index
    %268 = vector.load %arg33[%c0_121, %c0_122] : memref<1x32xf32, #tpu.memory_space<vmem>>, vector<1x32xf32>
    %269 = vector.broadcast %268 : vector<1x32xf32> to vector<16x32xf32>
    %270 = arith.addf %267, %269 : vector<16x32xf32>
    %cst_123 = arith.constant 5.000000e-01 : f32
    %271 = vector.broadcast %cst_123 : f32 to vector<16x32xf32>
    %272 = arith.mulf %271, %270 : vector<16x32xf32>
    %273 = arith.addf %272, %227 : vector<16x32xf32>
    %c0_124 = arith.constant 0 : index
    %c0_125 = arith.constant 0 : index
    %274 = vector.load %arg34[%c0_124, %c0_125] : memref<1x32xf32, #tpu.memory_space<vmem>>, vector<1x32xf32>
    %c0_126 = arith.constant 0 : index
    %c0_127 = arith.constant 0 : index
    %275 = vector.load %arg35[%c0_126, %c0_127] : memref<1x32xf32, #tpu.memory_space<vmem>>, vector<1x32xf32>
    %cst_128 = arith.constant dense<0.000000e+00> : vector<16xf32>
    %276 = vector.multi_reduction <add>, %273, %cst_128 [1] : vector<16x32xf32> to vector<16xf32>
    %277 = vector.shape_cast %276 : vector<16xf32> to vector<16x1xf32>
    %cst_129 = arith.constant 3.200000e+01 : f32
    %278 = vector.broadcast %cst_129 : f32 to vector<16x1xf32>
    %279 = arith.divf %277, %278 : vector<16x1xf32>
    %280 = vector.broadcast %279 : vector<16x1xf32> to vector<16x32xf32>
    %281 = arith.subf %273, %280 : vector<16x32xf32>
    %282 = arith.mulf %281, %281 : vector<16x32xf32>
    %cst_130 = arith.constant dense<0.000000e+00> : vector<16xf32>
    %283 = vector.multi_reduction <add>, %282, %cst_130 [1] : vector<16x32xf32> to vector<16xf32>
    %284 = vector.shape_cast %283 : vector<16xf32> to vector<16x1xf32>
    %cst_131 = arith.constant 3.200000e+01 : f32
    %285 = vector.broadcast %cst_131 : f32 to vector<16x1xf32>
    %286 = arith.divf %284, %285 : vector<16x1xf32>
    %287 = vector.broadcast %279 : vector<16x1xf32> to vector<16x32xf32>
    %288 = arith.subf %273, %287 : vector<16x32xf32>
    %cst_132 = arith.constant 9.99999974E-6 : f32
    %289 = vector.broadcast %cst_132 : f32 to vector<16x1xf32>
    %290 = arith.addf %286, %289 : vector<16x1xf32>
    %291 = math.rsqrt %290 : vector<16x1xf32>
    %292 = vector.broadcast %291 : vector<16x1xf32> to vector<16x32xf32>
    %293 = arith.mulf %288, %292 : vector<16x32xf32>
    %294 = vector.broadcast %274 : vector<1x32xf32> to vector<16x32xf32>
    %295 = arith.mulf %293, %294 : vector<16x32xf32>
    %296 = vector.broadcast %275 : vector<1x32xf32> to vector<16x32xf32>
    %297 = arith.addf %295, %296 : vector<16x32xf32>
    %c0_133 = arith.constant 0 : index
    %c0_134 = arith.constant 0 : index
    %298 = vector.load %arg36[%c0_133, %c0_134] : memref<32x128xbf16, #tpu.memory_space<vmem>>, vector<32x128xbf16>
    %299 = arith.truncf %297 : vector<16x32xf32> to vector<16x32xbf16>
    %cst_135 = arith.constant dense<0.000000e+00> : vector<16x128xf32>
    %300 = tpu.matmul %299, %298, %cst_135 {dimension_numbers = #tpu.dot_dimension_numbers<[1], [0], [0], [1], [0, 0, 1, 1], [], []>} : vector<16x32xbf16>, vector<32x128xbf16>, vector<16x128xf32> -> vector<16x128xf32>
    %c0_136 = arith.constant 0 : index
    %c0_137 = arith.constant 0 : index
    %301 = vector.load %arg37[%c0_136, %c0_137] : memref<1x128xf32, #tpu.memory_space<vmem>>, vector<1x128xf32>
    %302 = vector.broadcast %301 : vector<1x128xf32> to vector<16x128xf32>
    %303 = arith.addf %300, %302 : vector<16x128xf32>
    %c0_138 = arith.constant 0 : index
    %c0_139 = arith.constant 0 : index
    %304 = vector.load %arg40[%c0_138, %c0_139] : memref<128x128xf32, #tpu.memory_space<vmem>>, vector<128x128xf32>
    %cst_140 = arith.constant dense<0.000000e+00> : vector<16x128xf32>
    %305 = tpu.matmul %303, %304, %cst_140 {dimension_numbers = #tpu.dot_dimension_numbers<[1], [0], [0], [1], [0, 0, 1, 1], [], []>} : vector<16x128xf32>, vector<128x128xf32>, vector<16x128xf32> -> vector<16x128xf32>
    %306 = arith.subf %303, %305 : vector<16x128xf32>
    %307 = arith.mulf %306, %306 : vector<16x128xf32>
    %cst_141 = arith.constant dense<0.000000e+00> : vector<16x128xf32>
    %308 = tpu.matmul %307, %304, %cst_141 {dimension_numbers = #tpu.dot_dimension_numbers<[1], [0], [0], [1], [0, 0, 1, 1], [], []>} : vector<16x128xf32>, vector<128x128xf32>, vector<16x128xf32> -> vector<16x128xf32>
    %cst_142 = arith.constant 9.99999974E-6 : f32
    %309 = vector.broadcast %cst_142 : f32 to vector<16x128xf32>
    %310 = arith.addf %308, %309 : vector<16x128xf32>
    %311 = math.rsqrt %310 : vector<16x128xf32>
    %312 = arith.mulf %306, %311 : vector<16x128xf32>
    %c0_143 = arith.constant 0 : index
    %c0_144 = arith.constant 0 : index
    %313 = vector.load %arg38[%c0_143, %c0_144] : memref<1x128xf32, #tpu.memory_space<vmem>>, vector<1x128xf32>
    %314 = vector.broadcast %313 : vector<1x128xf32> to vector<16x128xf32>
    %315 = arith.mulf %312, %314 : vector<16x128xf32>
    %c0_145 = arith.constant 0 : index
    %c0_146 = arith.constant 0 : index
    %316 = vector.load %arg39[%c0_145, %c0_146] : memref<1x128xf32, #tpu.memory_space<vmem>>, vector<1x128xf32>
    %317 = vector.broadcast %316 : vector<1x128xf32> to vector<16x128xf32>
    %318 = arith.addf %315, %317 : vector<16x128xf32>
    %c0_147 = arith.constant 0 : index
    %c0_148 = arith.constant 0 : index
    %319 = vector.load %arg41[%c0_147, %c0_148] : memref<128x128xbf16, #tpu.memory_space<vmem>>, vector<128x128xbf16>
    %320 = arith.truncf %318 : vector<16x128xf32> to vector<16x128xbf16>
    %cst_149 = arith.constant dense<0.000000e+00> : vector<16x128xf32>
    %321 = tpu.matmul %320, %319, %cst_149 {dimension_numbers = #tpu.dot_dimension_numbers<[1], [0], [0], [1], [0, 0, 1, 1], [], []>} : vector<16x128xbf16>, vector<128x128xbf16>, vector<16x128xf32> -> vector<16x128xf32>
    %c0_150 = arith.constant 0 : index
    %c0_151 = arith.constant 0 : index
    %322 = vector.load %arg42[%c0_150, %c0_151] : memref<1x128xf32, #tpu.memory_space<vmem>>, vector<1x128xf32>
    %323 = vector.broadcast %322 : vector<1x128xf32> to vector<16x128xf32>
    %324 = arith.addf %321, %323 : vector<16x128xf32>
    %c0_152 = arith.constant 0 : index
    %c0_153 = arith.constant 0 : index
    %325 = vector.load %arg43[%c0_152, %c0_153] : memref<16x128xf32, #tpu.memory_space<vmem>>, vector<16x128xf32>
    tpu.vector_store %arg43[%c0_152, %c0_153], %324 {strides = array<i32>} : memref<16x128xf32, #tpu.memory_space<vmem>>, vector<16x128xf32>,
    return
  }
  func.func @transform_0(%arg0: i32) -> (i32, i32) {
    %c0_i32 = arith.constant 0 : i32
    %c0_i32_0 = arith.constant 0 : i32
    return %arg0, %c0_i32 : i32, i32
  }
  func.func @transform_1(%arg0: i32) -> (i32, i32) {
    %c0_i32 = arith.constant 0 : i32
    %c0_i32_0 = arith.constant 0 : i32
    %c0_i32_1 = arith.constant 0 : i32
    return %c0_i32, %c0_i32_0 : i32, i32
  }
  func.func @transform_2(%arg0: i32) -> (i32, i32) {
    %c0_i32 = arith.constant 0 : i32
    %c0_i32_0 = arith.constant 0 : i32
    %c0_i32_1 = arith.constant 0 : i32
    return %c0_i32, %c0_i32_0 : i32, i32
  }
  func.func @transform_3(%arg0: i32) -> (i32, i32) {
    %c0_i32 = arith.constant 0 : i32
    %c0_i32_0 = arith.constant 0 : i32
    %c0_i32_1 = arith.constant 0 : i32
    return %c0_i32, %c0_i32_0 : i32, i32
  }
  func.func @transform_4(%arg0: i32) -> (i32, i32) {
    %c0_i32 = arith.constant 0 : i32
    %c0_i32_0 = arith.constant 0 : i32
    %c0_i32_1 = arith.constant 0 : i32
    return %c0_i32, %c0_i32_0 : i32, i32
  }
  func.func @transform_5(%arg0: i32) -> (i32, i32) {
    %c0_i32 = arith.constant 0 : i32
    %c0_i32_0 = arith.constant 0 : i32
    %c0_i32_1 = arith.constant 0 : i32
    return %c0_i32, %c0_i32_0 : i32, i32
  }
  func.func @transform_6(%arg0: i32) -> (i32, i32) {
    %c0_i32 = arith.constant 0 : i32
    %c0_i32_0 = arith.constant 0 : i32
    %c0_i32_1 = arith.constant 0 : i32
    return %c0_i32, %c0_i32_0 : i32, i32
  }
  func.func @transform_7(%arg0: i32) -> (i32, i32) {
    %c0_i32 = arith.constant 0 : i32
    %c0_i32_0 = arith.constant 0 : i32
    %c0_i32_1 = arith.constant 0 : i32
    return %c0_i32, %c0_i32_0 : i32, i32
  }
  func.func @transform_8(%arg0: i32) -> (i32, i32) {
    %c0_i32 = arith.constant 0 : i32
    %c0_i32_0 = arith.constant 0 : i32
    %c0_i32_1 = arith.constant 0 : i32
    return %c0_i32, %c0_i32_0 : i32, i32
  }
  func.func @transform_9(%arg0: i32) -> (i32, i32) {
    %c0_i32 = arith.constant 0 : i32
    %c0_i32_0 = arith.constant 0 : i32
    %c0_i32_1 = arith.constant 0 : i32
    return %c0_i32, %c0_i32_0 : i32, i32
  }
  func.func @transform_10(%arg0: i32) -> (i32, i32) {
    %c0_i32 = arith.constant 0 : i32
    %c0_i32_0 = arith.constant 0 : i32
    %c0_i32_1 = arith.constant 0 : i32
    return %c0_i32, %c0_i32_0 : i32, i32
  }
  func.func @transform_11(%arg0: i32) -> (i32, i32) {
    %c0_i32 = arith.constant 0 : i32
    %c0_i32_0 = arith.constant 0 : i32
    %c0_i32_1 = arith.constant 0 : i32
    return %c0_i32, %c0_i32_0 : i32, i32
  }
  func.func @transform_12(%arg0: i32) -> (i32, i32) {
    %c0_i32 = arith.constant 0 : i32
    %c0_i32_0 = arith.constant 0 : i32
    %c0_i32_1 = arith.constant 0 : i32
    return %c0_i32, %c0_i32_0 : i32, i32
  }
  func.func @transform_13(%arg0: i32) -> (i32, i32) {
    %c0_i32 = arith.constant 0 : i32
    %c0_i32_0 = arith.constant 0 : i32
    %c0_i32_1 = arith.constant 0 : i32
    return %c0_i32, %c0_i32_0 : i32, i32
  }
  func.func @transform_14(%arg0: i32) -> (i32, i32) {
    %c0_i32 = arith.constant 0 : i32
    %c0_i32_0 = arith.constant 0 : i32
    %c0_i32_1 = arith.constant 0 : i32
    return %c0_i32, %c0_i32_0 : i32, i32
  }
  func.func @transform_15(%arg0: i32) -> (i32, i32) {
    %c0_i32 = arith.constant 0 : i32
    %c0_i32_0 = arith.constant 0 : i32
    %c0_i32_1 = arith.constant 0 : i32
    return %c0_i32, %c0_i32_0 : i32, i32
  }
  func.func @transform_16(%arg0: i32) -> (i32, i32) {
    %c0_i32 = arith.constant 0 : i32
    %c0_i32_0 = arith.constant 0 : i32
    %c0_i32_1 = arith.constant 0 : i32
    return %c0_i32, %c0_i32_0 : i32, i32
  }
  func.func @transform_17(%arg0: i32) -> (i32, i32) {
    %c0_i32 = arith.constant 0 : i32
    %c0_i32_0 = arith.constant 0 : i32
    %c0_i32_1 = arith.constant 0 : i32
    return %c0_i32, %c0_i32_0 : i32, i32
  }
  func.func @transform_18(%arg0: i32) -> (i32, i32) {
    %c0_i32 = arith.constant 0 : i32
    %c0_i32_0 = arith.constant 0 : i32
    %c0_i32_1 = arith.constant 0 : i32
    return %c0_i32, %c0_i32_0 : i32, i32
  }
  func.func @transform_19(%arg0: i32) -> (i32, i32) {
    %c0_i32 = arith.constant 0 : i32
    %c0_i32_0 = arith.constant 0 : i32
    %c0_i32_1 = arith.constant 0 : i32
    return %c0_i32, %c0_i32_0 : i32, i32
  }
  func.func @transform_20(%arg0: i32) -> (i32, i32) {
    %c0_i32 = arith.constant 0 : i32
    %c0_i32_0 = arith.constant 0 : i32
    %c0_i32_1 = arith.constant 0 : i32
    return %c0_i32, %c0_i32_0 : i32, i32
  }
  func.func @transform_21(%arg0: i32) -> (i32, i32) {
    %c0_i32 = arith.constant 0 : i32
    %c0_i32_0 = arith.constant 0 : i32
    %c0_i32_1 = arith.constant 0 : i32
    return %c0_i32, %c0_i32_0 : i32, i32
  }
  func.func @transform_22(%arg0: i32) -> (i32, i32, i32) {
    %c0_i32 = arith.constant 0 : i32
    %c0_i32_0 = arith.constant 0 : i32
    %c0_i32_1 = arith.constant 0 : i32
    %c0_i32_2 = arith.constant 0 : i32
    return %c0_i32, %c0_i32_0, %c0_i32_1 : i32, i32, i32
  }
  func.func @transform_23(%arg0: i32) -> (i32, i32) {
    %c0_i32 = arith.constant 0 : i32
    %c0_i32_0 = arith.constant 0 : i32
    %c0_i32_1 = arith.constant 0 : i32
    return %c0_i32, %c0_i32_0 : i32, i32
  }
  func.func @transform_24(%arg0: i32) -> (i32, i32) {
    %c0_i32 = arith.constant 0 : i32
    %c0_i32_0 = arith.constant 0 : i32
    %c0_i32_1 = arith.constant 0 : i32
    return %c0_i32, %c0_i32_0 : i32, i32
  }
  func.func @transform_25(%arg0: i32) -> (i32, i32) {
    %c0_i32 = arith.constant 0 : i32
    %c0_i32_0 = arith.constant 0 : i32
    %c0_i32_1 = arith.constant 0 : i32
    return %c0_i32, %c0_i32_0 : i32, i32
  }
  func.func @transform_26(%arg0: i32) -> (i32, i32) {
    %c0_i32 = arith.constant 0 : i32
    %c0_i32_0 = arith.constant 0 : i32
    %c0_i32_1 = arith.constant 0 : i32
    return %c0_i32, %c0_i32_0 : i32, i32
  }
  func.func @transform_27(%arg0: i32) -> (i32, i32) {
    %c0_i32 = arith.constant 0 : i32
    %c0_i32_0 = arith.constant 0 : i32
    %c0_i32_1 = arith.constant 0 : i32
    return %c0_i32, %c0_i32_0 : i32, i32
  }
  func.func @transform_28(%arg0: i32) -> (i32, i32) {
    %c0_i32 = arith.constant 0 : i32
    %c0_i32_0 = arith.constant 0 : i32
    %c0_i32_1 = arith.constant 0 : i32
    return %c0_i32, %c0_i32_0 : i32, i32
  }
  func.func @transform_29(%arg0: i32) -> (i32, i32) {
    %c0_i32 = arith.constant 0 : i32
    %c0_i32_0 = arith.constant 0 : i32
    %c0_i32_1 = arith.constant 0 : i32
    return %c0_i32, %c0_i32_0 : i32, i32
  }
  func.func @transform_30(%arg0: i32) -> (i32, i32) {
    %c0_i32 = arith.constant 0 : i32
    %c0_i32_0 = arith.constant 0 : i32
    %c0_i32_1 = arith.constant 0 : i32
    return %c0_i32, %c0_i32_0 : i32, i32
  }
  func.func @transform_31(%arg0: i32) -> (i32, i32) {
    %c0_i32 = arith.constant 0 : i32
    %c0_i32_0 = arith.constant 0 : i32
    %c0_i32_1 = arith.constant 0 : i32
    return %c0_i32, %c0_i32_0 : i32, i32
  }
  func.func @transform_32(%arg0: i32) -> (i32, i32) {
    %c0_i32 = arith.constant 0 : i32
    %c0_i32_0 = arith.constant 0 : i32
    %c0_i32_1 = arith.constant 0 : i32
    return %c0_i32, %c0_i32_0 : i32, i32
  }
  func.func @transform_33(%arg0: i32) -> (i32, i32) {
    %c0_i32 = arith.constant 0 : i32
    %c0_i32_0 = arith.constant 0 : i32
    %c0_i32_1 = arith.constant 0 : i32
    return %c0_i32, %c0_i32_0 : i32, i32
  }
  func.func @transform_34(%arg0: i32) -> (i32, i32) {
    %c0_i32 = arith.constant 0 : i32
    %c0_i32_0 = arith.constant 0 : i32
    %c0_i32_1 = arith.constant 0 : i32
    return %c0_i32, %c0_i32_0 : i32, i32
  }
  func.func @transform_35(%arg0: i32) -> (i32, i32) {
    %c0_i32 = arith.constant 0 : i32
    %c0_i32_0 = arith.constant 0 : i32
    %c0_i32_1 = arith.constant 0 : i32
    return %c0_i32, %c0_i32_0 : i32, i32
  }
  func.func @transform_36(%arg0: i32) -> (i32, i32) {
    %c0_i32 = arith.constant 0 : i32
    %c0_i32_0 = arith.constant 0 : i32
    %c0_i32_1 = arith.constant 0 : i32
    return %c0_i32, %c0_i32_0 : i32, i32
  }
  func.func @transform_37(%arg0: i32) -> (i32, i32) {
    %c0_i32 = arith.constant 0 : i32
    %c0_i32_0 = arith.constant 0 : i32
    %c0_i32_1 = arith.constant 0 : i32
    return %c0_i32, %c0_i32_0 : i32, i32
  }
  func.func @transform_38(%arg0: i32) -> (i32, i32) {
    %c0_i32 = arith.constant 0 : i32
    %c0_i32_0 = arith.constant 0 : i32
    %c0_i32_1 = arith.constant 0 : i32
    return %c0_i32, %c0_i32_0 : i32, i32
  }
  func.func @transform_39(%arg0: i32) -> (i32, i32) {
    %c0_i32 = arith.constant 0 : i32
    %c0_i32_0 = arith.constant 0 : i32
    %c0_i32_1 = arith.constant 0 : i32
    return %c0_i32, %c0_i32_0 : i32, i32
  }
  func.func @transform_40(%arg0: i32) -> (i32, i32) {
    %c0_i32 = arith.constant 0 : i32
    %c0_i32_0 = arith.constant 0 : i32
    %c0_i32_1 = arith.constant 0 : i32
    return %c0_i32, %c0_i32_0 : i32, i32
  }
  func.func @transform_41(%arg0: i32) -> (i32, i32) {
    %c0_i32 = arith.constant 0 : i32
    %c0_i32_0 = arith.constant 0 : i32
    %c0_i32_1 = arith.constant 0 : i32
    return %c0_i32, %c0_i32_0 : i32, i32
  }
  func.func @transform_42(%arg0: i32) -> (i32, i32) {
    %c0_i32 = arith.constant 0 : i32
    %c0_i32_0 = arith.constant 0 : i32
    return %arg0, %c0_i32 : i32, i32
  }
}

</mosaic_0001>

<bundles_post_ra>
// kernel: conformer_wrapper_forward.1
= control target key start
LH: loop header
LB: loop body
LE: loop exit
PB: predicated region body
PF: predicated region fallthrough
CT: control target
= control target key end

     0   :  { %vm200_vm0 = vcmask 261120   ;;  %s2558_s6 = smov 9   ;;  %v2559_v15 = vmov 0.0   ;;  %vm2560_vm1 = vmmov 0   ;;  %s2561_s10 = smov 7   ;;  %vm573_vm2 = vcmask 523264   ;;  %s2966_s0 = inlined_call_operand.smem [shape: u32[43], index: -1, kind: input, shape index: {}] }
   0x1   :  { %s1_s5 = sld [smem:[%s2966_s0]]   ;;  %2113 = vmatprep.subr.bf16.mxu1 %v2559_v15  ;;  %2141 = vmatprep.subr.bf16.mxu0 %v2559_v15  ;;  %s2562_s14 = smov 8   ;;  %vm698_vm3 = vcmask 130048  }
   0x2   :  { %s1895_s9 = sld [smem:[%s2966_s0 + %s2558_s6]]   ;;  %2117 = vmatprep.mubr.msk.bf16.mxu1 %vm2560_vm1, %v2559_v15  ;;  %2145 = vmatprep.mubr.msk.bf16.mxu0 %vm2560_vm1, %v2559_v15  ;;  %s2563_s18 = smov 11  }
   0x3   :  { %s1893_s13 = sld [smem:[%s2966_s0 + %s2561_s10]]   ;;  %s2564_s22 = smov 10  }
   0x4   :  { %s1894_s17 = sld [smem:[%s2966_s0 + %s2562_s14]]   ;;  %s2565_s26 = smov 12  }
   0x5   :  { %s1897_s21 = sld [smem:[%s2966_s0 + %s2563_s18]]   ;;  %s2566_s30 = smov 15  }
   0x6   :  { %s1896_s25 = sld [smem:[%s2966_s0 + %s2564_s22]]   ;;  %s2567_s4 = smov 3  }
   0x7   :  { %v2612_v0 = vld [vmem:[%s1_s5] sm:$0xff]  ;;  %v2614_v1 = vld [vmem:[%s1_s5 + $0x8] sm:$0xff]  ;;  %s1898_s29 = sld [smem:[%s2966_s0 + %s2565_s26]]   ;;  %s2568_s8 = smov 13  }
   0x8   :  { %v201_v2 = vsel %vm200_vm0, %v2612_v0, 0.0  ;;  %v204_v3 = vsel %vm200_vm0, %v2614_v1, 0.0  ;;  %v2438_v14 = vld [vmem:[%s1895_s9] sm:$0xff]   ;;  %v2439_v16 = vld [vmem:[%s1895_s9 + $0x8] sm:$0xff]   ;;  %s1901_s3 = sld [smem:[%s2966_s0 + %s2566_s30]]   ;;  %s2569_s12 = smov 14  }
   0x9   :  { %202 = vadd.xlane.f32.xlu0 %v201_v2  ;;  %2114 = vmatpush3.bf16.msra.mxu1 %v2438_v14  ;;  %v1929_v25 = vld [vmem:[%s1893_s13] ss:$0 sm:$0xff]  ;;  %s2682_s7 = sld [smem:[%s2966_s0 + %s2567_s4]]   ;;  %s2570_s16 = smov 1  }
   0xa   :  { %2115 = vmatprep.subr.bf16.mxu1 %v2559_v15  ;;  %v1930_v29 = vld [vmem:[%s1894_s17] ss:$0 sm:$0xff]  ;;  %s1899_s11 = sld [smem:[%s2966_s0 + %s2568_s8]]   ;;  %s2571_s20 = smov 2  }
   0xb   :  { %v2440_v34 = vld [vmem:[%s1897_s21] sm:$0xff]   ;;  %v2441_v35 = vld [vmem:[%s1897_s21 + $0x8] sm:$0xff]   ;;  %v2442_v36 = vld [vmem:[%s1897_s21 + $0x10] sm:$0xff]   ;;  %s1900_s15 = sld [smem:[%s2966_s0 + %s2569_s12]]   ;;  %s2572_s24 = smov 4  }
   0xc   :  { %v2443_v37 = vld [vmem:[%s1897_s21 + $0x18] sm:$0xff]   ;;  %v2444_v38 = vld [vmem:[%s1897_s21 + $0x20] sm:$0xff]   ;;  %v2445_v39 = vld [vmem:[%s1897_s21 + $0x28] sm:$0xff]   ;;  %s1887_s19 = sld [smem:[%s2966_s0 + %s2570_s16]]   ;;  %s2573_s28 = smov 96  }
   0xd   :  { %205 = vadd.xlane.f32.xlu0 %v204_v3  ;;  %2116 = vmatpush3.bf16.msra.mxu1 %v2439_v16  ;;  %v2446_v40 = vld [vmem:[%s1897_s21 + $0x30] sm:$0xff]   ;;  %v2447_v41 = vld [vmem:[%s1897_s21 + $0x38] sm:$0xff]   ;;  %v1931_v42 = vld [vmem:[%s1896_s25] ss:$0 sm:$0xff]  ;;  %s1888_s23 = sld [smem:[%s2966_s0 + %s2571_s20]]   ;;  %s2576_s4 = smov 16  }
   0xe   :  { %2121 = vmatprep.subr.bf16.mxu1 %v2559_v15  ;;  %v1935_v62 = vld [vmem:[%s1898_s29] ss:$0 sm:$0xff]  ;;  %s1890_s27 = sld [smem:[%s2966_s0 + %s2572_s24]]   ;;  %s2574_s29 = smov 5  }
   0xf   :  { %s1891_s2 = sld [smem:[%s2966_s0 + %s2574_s29]]   ;;  %s2577_s8 = smov 6  }
  0x10   :  { %s2578_s12 = smov 17   ;;  %s2579_s16 = smov 20  }
  0x11   :  { %s2580_s20 = smov 18   ;;  %s2581_s24 = smov 19  }
  0x12   :  { %s2586_s14 = smov 24   ;;  %s2587_s18 = smov 26  }
  0x13   :  { %s1910_s17 = sld [smem:[%s2966_s0 + %s2586_s14]]   ;;  %s2588_s22 = smov 29  }
  0x14   :  { %s1912_s21 = sld [smem:[%s2966_s0 + %s2587_s18]]   ;;  %s2589_s26 = smov 27  }
  0x15   :  { %s1915_s25 = sld [smem:[%s2966_s0 + %s2588_s22]]   ;;  %s2590_s30 = smov 28  }
  0x16   :  { %s1913_s29 = sld [smem:[%s2966_s0 + %s2589_s26]]   ;;  %s2591_s5 = smov 31  }
  0x17   :  { %s2592_s9 = smov 30   ;;  %s2601_s14 = smov 38  }
  0x18   :  { %s2602_s18 = smov 41   ;;  %s2603_s22 = smov 42  }
  0x96   :  { %v203_v4 = vpop.xlane.xlu0 %202 }
  0x97   :  { %v208_v5 = vmul.f32 0.03125, %v203_v4 }
  0x99   :  { %v210_v6 = vsub.f32 %v2612_v0, %v208_v5 }
  0x9a   :  { %v206_v7 = vpop.xlane.xlu0 %205 }
  0x9b   :  { %v209_v8 = vmul.f32 0.03125, %v206_v7  ;;  %v212_v9 = vmul.f32 %v210_v6, %v210_v6 }
  0x9d   :  { %v211_v10 = vsub.f32 %v2614_v1, %v209_v8  ;;  %v214_v11 = vsel %vm200_vm0, %v212_v9, 0.0 }
  0x9e   :  { %215 = vadd.xlane.f32.xlu1 %v214_v11 }
  0x9f   :  { %v213_v12 = vmul.f32 %v211_v10, %v211_v10 }
  0xa1   :  { %v217_v13 = vsel %vm200_vm0, %v213_v12, 0.0 }
  0xa2   :  { %218 = vadd.xlane.f32.xlu1 %v217_v13 }
 0x12b   :  { %v216_v17 = vpop.xlane.xlu1 %215 }
 0x12c   :  { %v220_v18 = vmul.f32 0.03125, %v216_v17 }
 0x12e   :  { %v222_v19 = vadd.f32 1e-05, %v220_v18 }
 0x12f   :  { %v219_v20 = vpop.xlane.xlu1 %218 }
 0x130   :  { %2482 = vrsqrt.f32 %v222_v19  ;;  %v221_v21 = vmul.f32 0.03125, %v219_v20 }
 0x132   :  { %v223_v22 = vadd.f32 1e-05, %v221_v21 }
 0x134   :  { %2484 = vrsqrt.f32 %v223_v22  ;;  %v2448_v22 = vld [vmem:[%s1901_s3] sm:$0xff]  }
 0x135   :  { %2142 = vmatpush3.bf16.msra.mxu0 %v2448_v22  ;;  %v193_v22 = vld [vmem:[%s1891_s2] sm:$0xff] }
 0x136   :  { %2143 = vmatprep.subr.bf16.mxu0 %v2559_v15 }
 0x13a   :  { %v2483_v23 = vpop.eup %2482 }
 0x13b   :  { %v226_v24 = vmul.f32 %v2483_v23, %v210_v6  ;;  %v2449_v23 = vld [vmem:[%s1901_s3 + $0x8] sm:$0xff]   ;;  %s2575_s3 = smov 64  }
 0x13c   :  { %2144 = vmatpush3.bf16.msra.mxu0 %v2449_v23 }
 0x13d   :  { %v234_v28 = vmul.f32 %v1929_v25, %v226_v24  ;;  %2149 = vmatprep.subr.bf16.mxu0 %v2559_v15 }
 0x13e   :  { %v2485_v26 = vpop.eup %2484 }
 0x13f   :  { %v227_v27 = vmul.f32 %v2485_v26, %v211_v10  ;;  %v242_v31 = vadd.f32 %v1930_v29, %v234_v28 }
 0x141   :  { %v235_v30 = vmul.f32 %v1929_v25, %v227_v27 }
 0x143   :  { %v243_v32 = vadd.f32 %v1930_v29, %v235_v30 }
 0x145   :  { %v248_v33 = vpack.c.bf16 %v243_v32, %v242_v31  ;;  %v1944_v31 = vld [vmem:[%s1899_s11] ss:$0 sm:$0xff]  ;;  %s1892_s11 = sld [smem:[%s2966_s0 + %s2577_s8]]  }
 0x146   :  { %s1917_s8 = sld [smem:[%s2966_s0 + %s2591_s5]]  }
 0x147   :  { %2118 = vmatmul.mubr.msk.bf16.vlgmr.msra.gmra.mrb[0].mxu1 %vm200_vm0, %v248_v33 }
 0x148   :  { %2137 = vmatprep.mubr.msk.bf16.mxu1 %vm2560_vm1, %v2559_v15  ;;  %2122 = vmatpush3.bf16.msra.mxu1 %v2440_v34 }
 0x149   :  { %2123 = vmatprep.subr.bf16.mxu1 %v2559_v15 }
 0x14c   :  { %2124 = vmatpush3.bf16.msra.mxu1 %v2441_v35 }
 0x14d   :  { %2125 = vmatprep.subr.bf16.mxu1 %v2559_v15 }
 0x150   :  { %2126 = vmatpush3.bf16.msra.mxu1 %v2442_v36  ;;  %v1945_v36 = vld [vmem:[%s1900_s15] ss:$0 sm:$0xff]  ;;  %s1903_s15 = sld [smem:[%s2966_s0 + %s2578_s12]]   ;;  %s2593_s12 = smov 32  }
 0x151   :  { %2127 = vmatprep.subr.bf16.mxu1 %v2559_v15 }
 0x154   :  { %2128 = vmatpush3.bf16.msra.mxu1 %v2443_v37 }
 0x155   :  { %2129 = vmatprep.subr.bf16.mxu1 %v2559_v15 }
 0x158   :  { %2130 = vmatpush3.bf16.msra.mxu1 %v2444_v38 }
 0x159   :  { %2131 = vmatprep.subr.bf16.mxu1 %v2559_v15 }
 0x15c   :  { %2132 = vmatpush3.bf16.msra.mxu1 %v2445_v39 }
 0x15d   :  { %2133 = vmatprep.subr.bf16.mxu1 %v2559_v15 }
 0x160   :  { %2134 = vmatpush3.bf16.msra.mxu1 %v2446_v40  ;;  %v2450_v40 = vld [vmem:[%s2682_s7] sm:$0xff]  }
 0x161   :  { %2135 = vmatprep.subr.bf16.mxu1 %v2559_v15 }
 0x164   :  { %2136 = vmatpush3.bf16.msra.mxu1 %v2447_v41 }
 0x21a   :  { %v305_v43 = vpop.f32.mrb[0].mxu1 }
 0x21b   :  { %v306_v44 = vadd.f32 %v1931_v42, %v305_v43  ;;  %v2119_v45 = vpop.f32.mrb[1].mxu1  ;;  %v2452_v43 = vld [vmem:[%s2682_s7 + $0x10] sm:$0xff]  }
 0x21c   :  { %v308_v46 = vpop.f32.mrb[2].mxu1 }
 0x21d   :  { %v312_v47 = vsub.f32 0.0, %v306_v44  ;;  %v309_v48 = vadd.f32 %v1931_v42, %v308_v46  ;;  %v2120_v49 = vpop.f32.mrb[3].mxu1  ;;  %v2451_v42 = vld [vmem:[%s2682_s7 + $0x8] sm:$0xff]  }
 0x21f   :  { %v314_v50 = vmul.f32 1.442695, %v312_v47  ;;  %v313_v51 = vsub.f32 0.0, %v309_v48 }
 0x221   :  { %2486 = vpow2.f32 %v314_v50  ;;  %v316_v52 = vmul.f32 1.442695, %v313_v51  ;;  %v177_v50 = vld [vmem:[%s1887_s19] sm:$0xff] }
 0x222   :  { %v179_v51 = vld [vmem:[%s1888_s23] sm:$0xff] }
 0x223   :  { %2488 = vpow2.f32 %v316_v52  ;;  %v178_v52 = vld [vmem:[%s1887_s19 + $0x8] sm:$0xff]  ;;  %s1906_s19 = sld [smem:[%s2966_s0 + %s2579_s16]]   ;;  %s2594_s16 = smov 35  }
 0x22b   :  { %v2487_v53 = vpop.eup %2486 }
 0x22c   :  { %v318_v54 = vadd.f32 1.0, %v2487_v53 }
 0x22d   :  { %v2489_v55 = vpop.eup %2488 }
 0x22e   :  { %2490 = vrcp.f32 %v318_v54  ;;  %v319_v56 = vadd.f32 1.0, %v2489_v55  ;;  %v180_v54 = vld [vmem:[%s1888_s23 + $0x8] sm:$0xff]  ;;  %s1904_s23 = sld [smem:[%s2966_s0 + %s2580_s20]]   ;;  %s2595_s20 = smov 39  }
 0x230   :  { %2492 = vrcp.f32 %v319_v56 }
 0x238   :  { %v2491_v57 = vpop.eup %2490 }
 0x239   :  { %v322_v59 = vmul.f32 %v2491_v57, %v306_v44  ;;  %v2453_v44 = vld [vmem:[%s2682_s7 + $0x18] sm:$0xff]   ;;  %s1902_s7 = sld [smem:[%s2966_s0 + %s2576_s4]]  }
 0x23a   :  { %v2493_v58 = vpop.eup %2492  ;;  %s1914_s4 = sld [smem:[%s2966_s0 + %s2590_s30]]  }
 0x23b   :  { %v323_v60 = vmul.f32 %v2493_v58, %v309_v48 }
 0x23d   :  { %v340_v61 = vpack.c.bf16 %v323_v60, %v322_v59  ;;  %v189_v60 = vld [vmem:[%s1890_s27] sm:$0xff] }
 0x23f   :  { %2138 = vmatmul.mubr.bf16.vlgmr.msra.gmra.mrb[4].mxu1 %v340_v61 }
 0x312   :  { %v430_v63 = vpop.f32.mrb[4].mxu1 }
 0x313   :  { %v431_v2 = vadd.f32 %v1935_v62, %v430_v63  ;;  %v2139_v3 = vpop.f32.mrb[5].mxu1 }
 0x314   :  { %v433_v4 = vpop.f32.mrb[6].mxu1  ;;  %v190_v3 = vld [vmem:[%s1890_s27 + $0x8] sm:$0xff] }
 0x315   :  { %v437_v5 = vmul.f32 0.5, %v431_v2  ;;  %v434_v6 = vadd.f32 %v1935_v62, %v433_v4  ;;  %v2140_v7 = vpop.f32.mrb[7].mxu1  ;;  %v191_v2 = vld [vmem:[%s1890_s27 + $0x10] sm:$0xff]  ;;  %v192_v4 = vld [vmem:[%s1890_s27 + $0x18] sm:$0xff]  ;;  %s1905_s27 = sld [smem:[%s2966_s0 + %s2581_s24]]   ;;  %s2596_s24 = smov 33  }
 0x317   :  { %v2661_v8 = vadd.f32 %v437_v5, %v2612_v0  ;;  %v438_v9 = vmul.f32 0.5, %v434_v6 }
 0x319   :  { %v2664_v10 = vadd.f32 %v438_v9, %v2614_v1  ;;  %v443_v11 = vsel %vm200_vm0, %v2661_v8, 0.0 }
 0x31a   :  { %444 = vadd.xlane.f32.xlu0 %v443_v11 }
 0x31b   :  { %v446_v12 = vsel %vm200_vm0, %v2664_v10, 0.0 }
 0x31c   :  { %447 = vadd.xlane.f32.xlu1 %v446_v12 }
 0x3a7   :  { %v445_v13 = vpop.xlane.xlu0 %444 }
 0x3a8   :  { %v449_v14 = vmul.f32 0.03125, %v445_v13 }
 0x3a9   :  { %v448_v16 = vpop.xlane.xlu1 %447 }
 0x3aa   :  { %v451_v17 = vsub.f32 %v2661_v8, %v449_v14  ;;  %v450_v18 = vmul.f32 0.03125, %v448_v16 }
 0x3ac   :  { %v452_v0 = vsub.f32 %v2664_v10, %v450_v18  ;;  %v453_v19 = vmul.f32 %v451_v17, %v451_v17 }
 0x3ae   :  { %v455_v1 = vsel %vm200_vm0, %v453_v19, 0.0  ;;  %v454_v20 = vmul.f32 %v452_v0, %v452_v0 }
 0x3af   :  { %456 = vadd.xlane.f32.xlu0 %v455_v1 }
 0x3b0   :  { %v458_v21 = vsel %vm200_vm0, %v454_v20, 0.0 }
 0x3b1   :  { %459 = vadd.xlane.f32.xlu1 %v458_v21 }
 0x43c   :  { %v457_v24 = vpop.xlane.xlu0 %456 }
 0x43d   :  { %v461_v25 = vmul.f32 0.03125, %v457_v24 }
 0x43e   :  { %v460_v26 = vpop.xlane.xlu1 %459 }
 0x43f   :  { %v463_v27 = vadd.f32 1e-05, %v461_v25  ;;  %v462_v28 = vmul.f32 0.03125, %v460_v26 }
 0x441   :  { %2494 = vrsqrt.f32 %v463_v27  ;;  %v464_v29 = vadd.f32 1e-05, %v462_v28  ;;  %v194_v28 = vld [vmem:[%s1891_s2 + $0x8] sm:$0xff] }
 0x443   :  { %2496 = vrsqrt.f32 %v464_v29 }
 0x44b   :  { %v2495_v30 = vpop.eup %2494 }
 0x44c   :  { %v467_v32 = vmul.f32 %v2495_v30, %v451_v17 }
 0x44d   :  { %v2497_v33 = vpop.eup %2496 }
 0x44e   :  { %v468_v34 = vmul.f32 %v2497_v33, %v452_v0  ;;  %v475_v35 = vmul.f32 %v1944_v31, %v467_v32  ;;  %v195_v0 = vld [vmem:[%s1891_s2 + $0x10] sm:$0xff]  ;;  %v196_v32 = vld [vmem:[%s1891_s2 + $0x18] sm:$0xff]  ;;  %s2583_s2 = smov 22  }
 0x44f   :  { %s2791_s6 = sld [smem:[%s2966_s0 + %s2583_s2]]   ;;  %s2598_s2 = smov 36  }
 0x450   :  { %v476_v37 = vmul.f32 %v1944_v31, %v468_v34  ;;  %v483_v38 = vadd.f32 %v1945_v36, %v475_v35 }
 0x452   :  { %v484_v39 = vadd.f32 %v1945_v36, %v476_v37 }
 0x454   :  { %v489_v41 = vpack.c.bf16 %v484_v39, %v483_v38 }
 0x456   :  { %2146 = vmatmul.mubr.msk.bf16.vlgmr.msra.gmra.mrb[0].mxu0 %vm200_vm0, %v489_v41 }
 0x457   :  { %2150 = vmatpush3.bf16.msra.mxu0 %v2450_v40  ;;  %2157 = vmatprep.mubr.msk.bf16.mxu0 %vm2560_vm1, %v2559_v15 }
 0x458   :  { %2151 = vmatprep.subr.bf16.mxu0 %v2559_v15 }
 0x45b   :  { %2152 = vmatpush3.bf16.msra.mxu0 %v2451_v42 }
 0x45c   :  { %2153 = vmatprep.subr.bf16.mxu0 %v2559_v15 }
 0x45f   :  { %2154 = vmatpush3.bf16.msra.mxu0 %v2452_v43 }
 0x460   :  { %2155 = vmatprep.subr.bf16.mxu0 %v2559_v15 }
 0x463   :  { %2156 = vmatpush3.bf16.msra.mxu0 %v2453_v44 }
 0x529   :  { %v539_v45 = vpop.f32.mrb[0].mxu0 }
 0x52a   :  { %v2147_v46 = vpop.f32.mrb[1].mxu0  ;;  %v546_v55 = vmul.f32 %v539_v45, %v177_v50 }
 0x52b   :  { %v542_v47 = vpop.f32.mrb[2].mxu0 }
 0x52c   :  { %v2700_v48 = vpack.c.bf16 %v542_v47, %v539_v45  ;;  %v2148_v49 = vpop.f32.mrb[3].mxu0  ;;  %v547_v59 = vmul.f32 %v542_v47, %v178_v52 }
 0x52e   :  { %2158 = vmatmul.mubr.msk.bf16.vlgmr.msra.gmra.mrb[4].mxu0 %vm573_vm2, %v2700_v48 }
 0x601   :  { %v611_v53 = vpop.f32.mrb[4].mxu0 }
 0x602   :  { %v618_v56 = vmul.f32 %v611_v53, %v179_v51  ;;  %v2159_v57 = vpop.f32.mrb[5].mxu0 }
 0x603   :  { %v614_v58 = vpop.f32.mrb[6].mxu0 }
 0x604   :  { %v620_v61 = vadd.f32 %v618_v56, %v546_v55  ;;  %v619_v62 = vmul.f32 %v614_v58, %v180_v54  ;;  %v2160_v63 = vpop.f32.mrb[7].mxu0 }
 0x606   :  { %v621_v5 = vadd.f32 %v619_v62, %v547_v59  ;;  %v622_v6 = vmul.f32 %v620_v61, %v189_v60  ;;  %v624_v7 = vmul.f32 %v620_v61, %v191_v2 }
 0x608   :  { %v623_v9 = vmul.f32 %v621_v5, %v190_v3  ;;  %v625_v11 = vmul.f32 %v621_v5, %v192_v4  ;;  %v628_v12 = vpack.c.bf16 %v621_v5, %v620_v61 }
 0x60a   :  { %v627_v13 = vpack.c.bf16 %v625_v11, %v624_v7  ;;  %630 = vrot.lane.b32.xlu0 %v628_v12, %s2573_s28  ;;  %v626_v14 = vpack.c.bf16 %v623_v9, %v622_v6  ;;  %v2454_v11 = vld [vmem:[%s1902_s7] sm:$0xff]   ;;  %v2455_v12 = vld [vmem:[%s1902_s7 + $0x8] sm:$0xff]   ;;  %s2582_s28 = smov 21   ;;  %s2584_s7 = smov 23  }
 0x60b   :  { %s1907_s1 = sld [smem:[%s2966_s0 + %s2582_s28]]   ;;  %s2597_s28 = smov 34  }
 0x60c   :  { %2163 = vmatprep.mubr.msk.bf16.mxu0 %vm200_vm0, %v626_v14  ;;  %s1909_s10 = sld [smem:[%s2966_s0 + %s2584_s7]]   ;;  %s2599_s7 = smov 40  }
 0x67c   :  { %v631_v16 = vpop.permute.xlu0 %630 }
 0x67d   :  { %v639_v17 = vsel %vm200_vm0, %v631_v16, 0  ;;  %2391 = vmatprep.subr.msk.bf16.mxu0 %vm200_vm0, %v631_v16  ;;  %v197_v16 = vld [vmem:[%s1892_s11] sm:$0x1]  ;;  %s1916_s11 = sld [smem:[%s2966_s0 + %s2592_s9]]  }
 0x67e   :  { %2162 = vmatpush3.bf16.xpose.msra.mxu0 %v639_v17 }
 0x67f   :  { %2173 = vmatprep.subr.bf16.mxu0 %v2559_v15 }
 0x685   :  { %2164 = vmatmul.mubr.msk.bf16.vlgmr.msra.gmra.mrb[8].mxu0 %vm200_vm0, %v627_v13  ;;  %v805_v13 = vlaneseq }
 0x686   :  { %2177 = vmatprep.mubr.msk.bf16.mxu0 %vm2560_vm1, %v2559_v15  ;;  %2174 = vmatpush3.bf16.msra.mxu0 %v2454_v11 }
 0x687   :  { %2175 = vmatprep.subr.bf16.mxu0 %v2559_v15  ;;  %v2746_v14 = vshrl.u32 %v805_v13, 7 }
 0x689   :  { %v807_v17 = vsub.s32 0, %v2746_v14  ;;  %vm1037_vm4 = vcmp.lt.s32.totalorder %v2746_v14, 2  ;;  %vm1048_vm5 = vcmp.lt.s32.totalorder %v2746_v14, 1  ;;  %vm1067_vm6 = vcmp.lt.s32.totalorder %v2746_v14, 7 }
 0x68a   :  { %2176 = vmatpush3.bf16.msra.mxu0 %v2455_v12  ;;  %vm1079_vm7 = vcmp.lt.s32.totalorder %v2746_v14, 6 }
 0x68b   :  { %2189 = vmatprep.subr.bf16.mxu0 %v2559_v15 }
 0x758   :  { %v2165_v18 = vpop.f32.mrb[8].mxu0 }
 0x759   :  { %v692_v19 = vmul.f32 0.25, %v2165_v18  ;;  %v675_v1 = vpop.f32.mrb[9].mxu0  ;;  %v812_v18 = vsub.f32 1.0, %v197_v16 }
 0x75a   :  { %v690_v20 = vmul.f32 0.25, %v675_v1  ;;  %v2166_v21 = vpop.f32.mrb[10].mxu0 }
 0x75b   :  { %v678_v23 = vpop.f32.mrb[11].mxu0  ;;  %v696_v24 = vadd.f32 %v692_v19, %v195_v0  ;;  %v693_v29 = vmul.f32 0.25, %v2166_v21  ;;  %v817_v0 = vrot.slane %v812_v18, %v807_v17  ;;  %v808_v19 = vrot.slane %v197_v16, %v807_v17 }
 0x75c   :  { %v691_v25 = vmul.f32 0.25, %v678_v23  ;;  %v694_v27 = vadd.f32 %v690_v20, %v193_v22 }
 0x75d   :  { %v705_v26 = vsel %vm698_vm3, %v696_v24, -inf  ;;  %v697_v34 = vadd.f32 %v693_v29, %v196_v32 }
 0x75e   :  { %706 = vmax.xlane.f32.xlu1 %v705_v26  ;;  %v699_v30 = vsel %vm698_vm3, %v694_v27, -inf  ;;  %v695_v31 = vadd.f32 %v691_v25, %v194_v28 }
 0x75f   :  { %v708_v35 = vsel %vm698_vm3, %v697_v34, -inf }
 0x760   :  { %v702_v33 = vsel %vm698_vm3, %v695_v31, -inf }
 0x762   :  { %700 = vmax.xlane.f32.xlu1 %v699_v30  ;;  %v1958_v30 = vld [vmem:[%s1903_s15] ss:$0 sm:$0xff]  ;;  %s1918_s15 = sld [smem:[%s2966_s0 + %s2593_s12]]  }
 0x766   :  { %703 = vmax.xlane.f32.xlu1 %v702_v33 }
 0x76a   :  { %709 = vmax.xlane.f32.xlu1 %v708_v35 }
 0x7eb   :  { %v707_v36 = vpop.xlane.xlu1 %706 }
 0x7ec   :  { %v713_v37 = vsub.f32 %v696_v24, %v707_v36 }
 0x7ee   :  { %v719_v38 = vmul.f32 1.442695, %v713_v37 }
 0x7ef   :  { %v701_v39 = vpop.xlane.xlu1 %700 }
 0x7f0   :  { %2498 = vpow2.f32 %v719_v38  ;;  %v711_v40 = vsub.f32 %v694_v27, %v701_v39 }
 0x7f2   :  { %v715_v41 = vmul.f32 1.442695, %v711_v40 }
 0x7f3   :  { %v704_v42 = vpop.xlane.xlu1 %703 }
 0x7f4   :  { %2500 = vpow2.f32 %v715_v41  ;;  %v712_v43 = vsub.f32 %v695_v31, %v704_v42 }
 0x7f6   :  { %v717_v47 = vmul.f32 1.442695, %v712_v43 }
 0x7f7   :  { %v710_v44 = vpop.xlane.xlu1 %709 }
 0x7f8   :  { %v714_v45 = vsub.f32 %v697_v34, %v710_v44 }
 0x7fa   :  { %v2499_v46 = vpop.eup %2498  ;;  %v721_v49 = vmul.f32 1.442695, %v714_v45 }
 0x7fb   :  { %v729_v50 = vsel %vm698_vm3, %v2499_v46, 0.0 }
 0x7fc   :  { %2502 = vpow2.f32 %v721_v49  ;;  %730 = vadd.xlane.f32.xlu0 %v729_v50  ;;  %v2456_v50 = vld [vmem:[%s1906_s19] sm:$0xff]  }
 0x7fd   :  { %2504 = vpow2.f32 %v717_v47 }
 0x7fe   :  { %v2501_v51 = vpop.eup %2500 }
 0x7ff   :  { %v723_v52 = vsel %vm698_vm3, %v2501_v51, 0.0 }
 0x800   :  { %724 = vadd.xlane.f32.xlu1 %v723_v52 }
 0x806   :  { %v2503_v53 = vpop.eup %2502 }
 0x807   :  { %v732_v54 = vsel %vm698_vm3, %v2503_v53, 0.0  ;;  %v2505_v55 = vpop.eup %2504 }
 0x808   :  { %733 = vadd.xlane.f32.xlu1 %v732_v54  ;;  %v726_v56 = vsel %vm698_vm3, %v2505_v55, 0.0 }
 0x80c   :  { %727 = vadd.xlane.f32.xlu1 %v726_v56 }
 0x81d   :  { %746 = vrot.lane.b32.xlu1 %v2700_v48, %s2575_s3 }
 0x889   :  { %v731_v59 = vpop.xlane.xlu0 %730 }
 0x88d   :  { %v725_v57 = vpop.xlane.xlu1 %724 }
 0x895   :  { %v734_v58 = vpop.xlane.xlu1 %733 }
 0x896   :  { %2506 = vrcp.f32 %v734_v58 }
 0x897   :  { %2508 = vrcp.f32 %v725_v57 }
 0x898   :  { %2510 = vrcp.f32 %v731_v59 }
 0x899   :  { %v728_v60 = vpop.xlane.xlu1 %727 }
 0x89a   :  { %2512 = vrcp.f32 %v728_v60  ;;  %v1962_v60 = vld [vmem:[%s1904_s23] ss:$0 sm:$0xff]  ;;  %s2911_s23 = sld [smem:[%s2966_s0 + %s2595_s20]]  }
 0x89d   :  { %v747_v61 = vpop.permute.xlu1 %746 }
 0x89e   :  { %2167 = vmatprep.subr.bf16.mxu1 %v747_v61 }
 0x89f   :  { %2168 = vmatpush3.bf16.msra.mxu1 %v747_v61 }
 0x8a0   :  { %2181 = vmatprep.subr.bf16.mxu1 %v2559_v15  ;;  %v2507_v62 = vpop.eup %2506 }
 0x8a1   :  { %v2509_v63 = vpop.eup %2508  ;;  %v742_v4 = vmul.f32 %v2507_v62, %v2503_v53 }
 0x8a2   :  { %v2511_v2 = vpop.eup %2510  ;;  %v739_v5 = vmul.f32 %v2509_v63, %v2501_v51  ;;  %v2457_v51 = vld [vmem:[%s1906_s19 + $0x8] sm:$0xff]   ;;  %s1921_s19 = sld [smem:[%s2966_s0 + %s2594_s16]]  }
 0x8a3   :  { %v741_v6 = vmul.f32 %v2511_v2, %v2499_v46  ;;  %v1963_v2 = vld [vmem:[%s1905_s27] ss:$0 sm:$0xff]  ;;  %s1919_s27 = sld [smem:[%s2966_s0 + %s2596_s24]]  }
 0x8a4   :  { %v2513_v3 = vpop.eup %2512 }
 0x8a5   :  { %v740_v48 = vmul.f32 %v2513_v3, %v2505_v55  ;;  %v744_v9 = vpack.c.bf16 %v742_v4, %v741_v6  ;;  %v1964_v6 = vld [vmem:[%s1907_s1] ss:$0 sm:$0xff]  ;;  %s1920_s1 = sld [smem:[%s2966_s0 + %s2597_s28]]  }
 0x8a7   :  { %v743_v7 = vpack.c.bf16 %v740_v48, %v739_v5 }
 0x8a9   :  { %2169 = vmatprep.mubr.msk.bf16.mxu1 %vm698_vm3, %v743_v7 }
 0x8aa   :  { %2170 = vmatmul.mubr.msk.bf16.vlgmr.msra.gmra.mrb[8].mxu1 %vm698_vm3, %v744_v9 }
 0x8ab   :  { %2185 = vmatprep.mubr.msk.bf16.mxu1 %vm2560_vm1, %v2559_v15  ;;  %2182 = vmatpush3.bf16.msra.mxu1 %v2456_v50 }
 0x8ac   :  { %2183 = vmatprep.subr.bf16.mxu1 %v2559_v15 }
 0x8af   :  { %2184 = vmatpush3.bf16.msra.mxu1 %v2457_v51 }
 0x8b0   :  { %2201 = vmatprep.subr.bf16.mxu1 %v2559_v15 }
 0x97d   :  { %v2171_v1 = vpop.f32.mrb[8].mxu1 }
 0x97e   :  { %v819_v20 = vmul.f32 %v2171_v1, %v817_v0  ;;  %v789_v21 = vpop.f32.mrb[9].mxu1 }
 0x97f   :  { %v810_v22 = vmul.f32 %v808_v19, %v789_v21  ;;  %v2172_v23 = vpop.f32.mrb[10].mxu1 }
 0x980   :  { %v820_v24 = vmul.f32 %v2172_v23, %v817_v0  ;;  %v792_v25 = vpop.f32.mrb[11].mxu1 }
 0x981   :  { %v821_v26 = vadd.f32 %v819_v20, %v810_v22  ;;  %v811_v27 = vmul.f32 %v808_v19, %v792_v25 }
 0x983   :  { %v822_v28 = vadd.f32 %v820_v24, %v811_v27 }
 0x985   :  { %v827_v29 = vpack.c.bf16 %v822_v28, %v821_v26 }
 0x987   :  { %2178 = vmatmul.mubr.msk.bf16.vlgmr.msra.gmra.mrb[12].mxu0 %vm200_vm0, %v827_v29 }
 0x988   :  { %2197 = vmatprep.mubr.msk.bf16.mxu0 %vm2560_vm1, %v2559_v15 }
 0xa5a   :  { %v884_v31 = vpop.f32.mrb[12].mxu0 }
 0xa5b   :  { %v885_v32 = vadd.f32 %v1958_v30, %v884_v31  ;;  %v2179_v33 = vpop.f32.mrb[13].mxu0 }
 0xa5c   :  { %v887_v34 = vpop.f32.mrb[14].mxu0  ;;  %v1040_v33 = vld [vmem:[%s2791_s6] sm:$0xff] }
 0xa5d   :  { %v2756_v35 = vadd.f32 %v885_v32, %v2661_v8  ;;  %v888_v36 = vadd.f32 %v1958_v30, %v887_v34  ;;  %v2180_v37 = vpop.f32.mrb[15].mxu0 }
 0xa5f   :  { %v2759_v38 = vadd.f32 %v888_v36, %v2664_v10  ;;  %v895_v39 = vsel %vm200_vm0, %v2756_v35, 0.0  ;;  %v1968_v36 = vld [vmem:[%s1909_s10] ss:$0 sm:$0xff]  ;;  %s1926_s10 = sld [smem:[%s2966_s0 + %s2599_s7]]  }
 0xa60   :  { %896 = vadd.xlane.f32.xlu1 %v895_v39 }
 0xa61   :  { %v898_v40 = vsel %vm200_vm0, %v2759_v38, 0.0 }
 0xa62   :  { %899 = vadd.xlane.f32.xlu0 %v898_v40  ;;  %v1969_v40 = vld [vmem:[%s2791_s6 + $0x10] sm:$0xff] }
 0xaed   :  { %v897_v41 = vpop.xlane.xlu1 %896 }
 0xaee   :  { %v901_v42 = vmul.f32 0.03125, %v897_v41  ;;  %v1041_v41 = vld [vmem:[%s2791_s6 + $0x8] sm:$0xff] }
 0xaef   :  { %v900_v43 = vpop.xlane.xlu0 %899 }
 0xaf0   :  { %v903_v44 = vsub.f32 %v2756_v35, %v901_v42  ;;  %v902_v8 = vmul.f32 0.03125, %v900_v43 }
 0xaf2   :  { %v904_v45 = vsub.f32 %v2759_v38, %v902_v8  ;;  %v905_v46 = vmul.f32 %v903_v44, %v903_v44 }
 0xaf4   :  { %v907_v10 = vsel %vm200_vm0, %v905_v46, 0.0  ;;  %v906_v47 = vmul.f32 %v904_v45, %v904_v45 }
 0xaf5   :  { %908 = vadd.xlane.f32.xlu0 %v907_v10  ;;  %v1970_v10 = vld [vmem:[%s2791_s6 + $0x18] sm:$0xff] }
 0xaf6   :  { %v910_v49 = vsel %vm200_vm0, %v906_v47, 0.0 }
 0xaf9   :  { %911 = vadd.xlane.f32.xlu0 %v910_v49 }
 0xb82   :  { %v909_v52 = vpop.xlane.xlu0 %908 }
 0xb83   :  { %v913_v53 = vmul.f32 0.03125, %v909_v52  ;;  %v1973_v52 = vld [vmem:[%s2791_s6 + $0x30] sm:$0xff] }
 0xb85   :  { %v915_v54 = vadd.f32 1e-05, %v913_v53 }
 0xb86   :  { %v912_v55 = vpop.xlane.xlu0 %911 }
 0xb87   :  { %2514 = vrsqrt.f32 %v915_v54  ;;  %v914_v56 = vmul.f32 0.03125, %v912_v55  ;;  %v1972_v54 = vld [vmem:[%s2791_s6 + $0x28] sm:$0xff] }
 0xb89   :  { %v916_v57 = vadd.f32 1e-05, %v914_v56 }
 0xb8b   :  { %2516 = vrsqrt.f32 %v916_v57 }
 0xb91   :  { %v2515_v58 = vpop.eup %2514 }
 0xb92   :  { %v919_v59 = vmul.f32 %v2515_v58, %v903_v44  ;;  %v1971_v44 = vld [vmem:[%s2791_s6 + $0x20] sm:$0xff] }
 0xb94   :  { %v927_v62 = vmul.f32 %v1962_v60, %v919_v59 }
 0xb95   :  { %v2517_v61 = vpop.eup %2516 }
 0xb96   :  { %v920_v63 = vmul.f32 %v2517_v61, %v904_v45  ;;  %v935_v4 = vadd.f32 %v1963_v2, %v927_v62  ;;  %v1974_v62 = vld [vmem:[%s2791_s6 + $0x38] sm:$0xff] }
 0xb98   :  { %v928_v3 = vmul.f32 %v1962_v60, %v920_v63  ;;  %v1975_v60 = vld [vmem:[%s2791_s6 + $0x40] sm:$0xff] }
 0xb9a   :  { %v936_v5 = vadd.f32 %v1963_v2, %v928_v3 }
 0xb9c   :  { %v941_v48 = vpack.c.bf16 %v936_v5, %v935_v4 }
 0xb9e   :  { %2186 = vmatmul.mubr.msk.bf16.vlgmr.msra.gmra.mrb[12].mxu1 %vm200_vm0, %v941_v48  ;;  %v1976_v48 = vld [vmem:[%s2791_s6 + $0x48] sm:$0xff]  ;;  %s1922_s6 = sld [smem:[%s2966_s0 + %s2598_s2]]  }
 0xb9f   :  { %2205 = vmatprep.mubr.msk.bf16.mxu1 %vm2560_vm1, %v2559_v15 }
 0xc71   :  { %v998_v7 = vpop.f32.mrb[12].mxu1 }
 0xc72   :  { %v999_v9 = vadd.f32 %v1964_v6, %v998_v7  ;;  %v2187_v11 = vpop.f32.mrb[13].mxu1 }
 0xc73   :  { %v1001_v12 = vpop.f32.mrb[14].mxu1 }
 0xc74   :  { %v1005_v13 = vsub.f32 0.0, %v999_v9  ;;  %v1002_v16 = vadd.f32 %v1964_v6, %v1001_v12  ;;  %v2188_v17 = vpop.f32.mrb[15].mxu1 }
 0xc76   :  { %v1007_v18 = vmul.f32 1.442695, %v1005_v13  ;;  %v1006_v0 = vsub.f32 0.0, %v1002_v16 }
 0xc78   :  { %2518 = vpow2.f32 %v1007_v18  ;;  %v1009_v19 = vmul.f32 1.442695, %v1006_v0 }
 0xc7a   :  { %2520 = vpow2.f32 %v1009_v19 }
 0xc82   :  { %v2519_v1 = vpop.eup %2518 }
 0xc83   :  { %v1011_v20 = vadd.f32 1.0, %v2519_v1 }
 0xc84   :  { %v2521_v21 = vpop.eup %2520 }
 0xc85   :  { %2522 = vrcp.f32 %v1011_v20  ;;  %v1012_v22 = vadd.f32 1.0, %v2521_v21 }
 0xc87   :  { %2524 = vrcp.f32 %v1012_v22 }
 0xc8f   :  { %v2523_v23 = vpop.eup %2522 }
 0xc90   :  { %1017 = vrot.lane.b32.xlu0 %v2523_v23, %s2575_s3 }
 0xc91   :  { %v2525_v24 = vpop.eup %2524 }
 0xc92   :  { %1019 = vrot.lane.b32.xlu1 %v2525_v24, %s2575_s3  ;;  %s2585_s3 = smov 25  }
 0xc93   :  { %s1911_s13 = sld [smem:[%s2966_s0 + %s2585_s3]]   ;;  %s2600_s3 = smov 37  }
 0xd02   :  { %v1018_v25 = vpop.permute.xlu0 %1017 }
 0xd03   :  { %v1023_v26 = vmul.f32 %v1018_v25, %v999_v9 }
 0xd04   :  { %v1020_v27 = vpop.permute.xlu1 %1019 }
 0xd05   :  { %v1024_v28 = vmul.f32 %v1020_v27, %v1002_v16  ;;  %v1033_v29 = vrot.slane %v1023_v26, 6  ;;  %v1046_v30 = vrot.slane %v1023_v26, 7  ;;  %v1065_v43 = vrot.slane %v1023_v26, 1 }
 0xd06   :  { %v1077_v53 = vrot.slane %v1023_v26, 2  ;;  %v1061_v56 = vmul.f32 %v1971_v44, %v1023_v26  ;;  %v2461_v44 = vld [vmem:[%s1911_s13 + $0x18] sm:$0xff]  }
 0xd07   :  { %v1034_v31 = vrot.slane %v1024_v28, 6  ;;  %v1047_v32 = vrot.slane %v1024_v28, 7  ;;  %v1066_v34 = vrot.slane %v1024_v28, 1  ;;  %v1078_v8 = vrot.slane %v1024_v28, 2 }
 0xd08   :  { %v1062_v4 = vmul.f32 %v1972_v54, %v1024_v28 }
 0xd09   :  { %v1039_v37 = vsel %vm1037_vm4, %v1034_v31, %v1033_v29  ;;  %v1050_v39 = vsel %vm1048_vm5, %v1047_v32, %v1046_v30  ;;  %v1038_v45 = vsel %vm1037_vm4, %v1033_v29, %v1034_v31  ;;  %v1049_v46 = vsel %vm1048_vm5, %v1046_v30, %v1047_v32 }
 0xd0a   :  { %v1042_v42 = vmul.f32 %v1040_v33, %v1039_v37  ;;  %v1054_v49 = vmul.f32 %v1969_v40, %v1050_v39  ;;  %v1043_v50 = vmul.f32 %v1041_v41, %v1038_v45  ;;  %v1068_v51 = vsel %vm1067_vm6, %v1065_v43, %v1066_v34  ;;  %v2458_v41 = vld [vmem:[%s1911_s13] sm:$0xff]  }
 0xd0b   :  { %v1055_v58 = vmul.f32 %v1970_v10, %v1049_v46  ;;  %v1080_v59 = vsel %vm1079_vm7, %v1077_v53, %v1078_v8  ;;  %v1069_v61 = vsel %vm1067_vm6, %v1066_v34, %v1065_v43  ;;  %v1073_v2 = vmul.f32 %v1973_v52, %v1068_v51  ;;  %2190 = vmatpush3.bf16.msra.mxu0 %v2458_v41  ;;  %v2460_v43 = vld [vmem:[%s1911_s13 + $0x10] sm:$0xff]   ;;  %v2469_v41 = vld [vmem:[%s1917_s8 + $0x28] sm:$0xff]  }
 0xd0c   :  { %v1044_v47 = vadd.f32 %v1968_v36, %v1042_v42  ;;  %v1045_v57 = vadd.f32 %v1968_v36, %v1043_v50  ;;  %v1081_v5 = vsel %vm1079_vm7, %v1078_v8, %v1077_v53  ;;  %v1085_v7 = vmul.f32 %v1975_v60, %v1080_v59  ;;  %2191 = vmatprep.subr.bf16.mxu0 %v2559_v15  ;;  %v2459_v42 = vld [vmem:[%s1911_s13 + $0x8] sm:$0xff]   ;;  %v1977_v53 = vld [vmem:[%s1910_s17] ss:$0 sm:$0xff]  ;;  %s1923_s13 = sld [smem:[%s2966_s0 + %s2600_s3]]  }
 0xd0d   :  { %v1074_v11 = vmul.f32 %v1974_v62, %v1069_v61  ;;  %v1086_v16 = vmul.f32 %v1976_v48, %v1081_v5  ;;  %s1924_s17 = sld [smem:[%s2966_s0 + %s2601_s14]]  }
 0xd0e   :  { %v1056_v55 = vadd.f32 %v1054_v49, %v1044_v47  ;;  %v1057_v3 = vadd.f32 %v1055_v58, %v1045_v57  ;;  %v1978_v58 = vld [vmem:[%s1912_s21] ss:$0 sm:$0xff]  ;;  %s1927_s21 = sld [smem:[%s2966_s0 + %s2602_s18]]  }
 0xd0f   :  { %2192 = vmatpush3.bf16.msra.mxu0 %v2459_v42  ;;  %v2470_v42 = vld [vmem:[%s1917_s8 + $0x30] sm:$0xff]  }
 0xd10   :  { %v1063_v63 = vadd.f32 %v1061_v56, %v1056_v55  ;;  %v1064_v9 = vadd.f32 %v1062_v4, %v1057_v3  ;;  %2193 = vmatprep.subr.bf16.mxu0 %v2559_v15 }
 0xd12   :  { %v1075_v6 = vadd.f32 %v1073_v2, %v1063_v63  ;;  %v1076_v13 = vadd.f32 %v1074_v11, %v1064_v9 }
 0xd13   :  { %2194 = vmatpush3.bf16.msra.mxu0 %v2460_v43  ;;  %v2471_v43 = vld [vmem:[%s1917_s8 + $0x38] sm:$0xff]  }
 0xd14   :  { %v1087_v12 = vadd.f32 %v1085_v7, %v1075_v6  ;;  %v1088_v18 = vadd.f32 %v1086_v16, %v1076_v13  ;;  %2195 = vmatprep.subr.bf16.mxu0 %v2559_v15 }
 0xd16   :  { %v1089_v17 = vsub.f32 0.0, %v1087_v12  ;;  %v1090_v19 = vsub.f32 0.0, %v1088_v18 }
 0xd17   :  { %2196 = vmatpush3.bf16.msra.mxu0 %v2461_v44  ;;  %v1986_v44 = vld [vmem:[%s1916_s11] ss:$0 sm:$0xff] }
 0xd18   :  { %v1091_v0 = vmul.f32 1.442695, %v1089_v17  ;;  %v1093_v1 = vmul.f32 1.442695, %v1090_v19  ;;  %2229 = vmatprep.subr.bf16.mxu0 %v2559_v15 }
 0xd1a   :  { %2526 = vpow2.f32 %v1091_v0  ;;  %v2463_v0 = vld [vmem:[%s1915_s25 + $0x8] sm:$0xff]  }
 0xd1b   :  { %2528 = vpow2.f32 %v1093_v1 }
 0xd24   :  { %v2527_v20 = vpop.eup %2526 }
 0xd25   :  { %v1095_v21 = vadd.f32 1.0, %v2527_v20  ;;  %v2529_v22 = vpop.eup %2528 }
 0xd26   :  { %v1096_v14 = vadd.f32 1.0, %v2529_v22 }
 0xd27   :  { %2530 = vrcp.f32 %v1095_v21 }
 0xd28   :  { %2532 = vrcp.f32 %v1096_v14 }
 0xd31   :  { %v2531_v23 = vpop.eup %2530 }
 0xd32   :  { %v1099_v24 = vmul.f32 %v2531_v23, %v1087_v12  ;;  %v2533_v25 = vpop.eup %2532 }
 0xd33   :  { %v1100_v27 = vmul.f32 %v2533_v25, %v1088_v18  ;;  %v2462_v18 = vld [vmem:[%s1915_s25] sm:$0xff]   ;;  %s1928_s25 = sld [smem:[%s2966_s0 + %s2603_s22]]  }
 0xd34   :  { %v1101_v26 = vsel %vm573_vm2, %v1099_v24, 0.0  ;;  %2202 = vmatpush3.bf16.msra.mxu1 %v2462_v18  ;;  %v1984_v25 = vld [vmem:[%s1913_s29] ss:$0 sm:$0xff] }
 0xd35   :  { %1102 = vadd.xlane.f32.xlu0 %v1101_v26  ;;  %v1104_v28 = vsel %vm573_vm2, %v1100_v27, 0.0  ;;  %2203 = vmatprep.subr.bf16.mxu1 %v2559_v15 }
 0xd36   :  { %1105 = vadd.xlane.f32.xlu1 %v1104_v28 }
 0xd38   :  { %2204 = vmatpush3.bf16.msra.mxu1 %v2463_v0 }
 0xd39   :  { %2209 = vmatprep.subr.bf16.mxu1 %v2559_v15 }
 0xdc2   :  { %v1103_v29 = vpop.xlane.xlu0 %1102 }
 0xdc3   :  { %v1108_v30 = vmul.f32 0.015625, %v1103_v29  ;;  %v1106_v31 = vpop.xlane.xlu1 %1105  ;;  %v1985_v29 = vld [vmem:[%s1914_s4] ss:$0 sm:$0xff] }
 0xdc4   :  { %v1109_v33 = vmul.f32 0.015625, %v1106_v31 }
 0xdc5   :  { %v1110_v32 = vsub.f32 %v1099_v24, %v1108_v30 }
 0xdc6   :  { %v1111_v34 = vsub.f32 %v1100_v27, %v1109_v33 }
 0xdc7   :  { %v1112_v36 = vmul.f32 %v1110_v32, %v1110_v32 }
 0xdc8   :  { %v1113_v39 = vmul.f32 %v1111_v34, %v1111_v34 }
 0xdc9   :  { %v1114_v37 = vsel %vm573_vm2, %v1112_v36, 0.0  ;;  %v2465_v36 = vld [vmem:[%s1917_s8 + $0x8] sm:$0xff]  }
 0xdca   :  { %1115 = vadd.xlane.f32.xlu0 %v1114_v37  ;;  %v1117_v40 = vsel %vm573_vm2, %v1113_v39, 0.0  ;;  %v2466_v37 = vld [vmem:[%s1917_s8 + $0x10] sm:$0xff]   ;;  %v2467_v39 = vld [vmem:[%s1917_s8 + $0x18] sm:$0xff]  }
 0xdce   :  { %1118 = vadd.xlane.f32.xlu0 %v1117_v40  ;;  %v2468_v40 = vld [vmem:[%s1917_s8 + $0x20] sm:$0xff]  }
 0xe57   :  { %v1116_v8 = vpop.xlane.xlu0 %1115 }
 0xe58   :  { %v1120_v45 = vmul.f32 0.015625, %v1116_v8 }
 0xe5a   :  { %v1122_v46 = vmax.f32 %v1120_v45, 1e-06 }
 0xe5b   :  { %v1119_v10 = vpop.xlane.xlu0 %1118 }
 0xe5c   :  { %2534 = vrsqrt.f32 %v1122_v46  ;;  %v1121_v47 = vmul.f32 0.015625, %v1119_v10 }
 0xe5e   :  { %v1123_v49 = vmax.f32 %v1121_v47, 1e-06 }
 0xe60   :  { %2536 = vrsqrt.f32 %v1123_v49 }
 0xe66   :  { %v2535_v50 = vpop.eup %2534 }
 0xe67   :  { %v1126_v51 = vmul.f32 %v2535_v50, %v1110_v32 }
 0xe69   :  { %v1135_v55 = vmul.f32 %v1977_v53, %v1126_v51 }
 0xe6a   :  { %v2537_v52 = vpop.eup %2536 }
 0xe6b   :  { %v1127_v54 = vmul.f32 %v2537_v52, %v1111_v34  ;;  %v2464_v34 = vld [vmem:[%s1917_s8] sm:$0xff]  }
 0xe6d   :  { %v1136_v56 = vmul.f32 %v1977_v53, %v1127_v54 }
 0xe6f   :  { %v1145_v57 = vpack.c.bf16 %v1136_v56, %v1135_v55 }
 0xe71   :  { %2198 = vmatmul.mubr.msk.bf16.vlgmr.msra.gmra.mrb[16].mxu0 %vm573_vm2, %v1145_v57 }
 0xe72   :  { %2233 = vmatprep.mubr.msk.bf16.mxu0 %vm2560_vm1, %v2559_v15 }
 0xf44   :  { %v1214_v59 = vpop.f32.mrb[16].mxu0 }
 0xf45   :  { %v1215_v60 = vadd.f32 %v1978_v58, %v1214_v59  ;;  %v2199_v61 = vpop.f32.mrb[17].mxu0 }
 0xf46   :  { %v1217_v62 = vpop.f32.mrb[18].mxu0 }
 0xf47   :  { %v2847_v63 = vadd.f32 %v1215_v60, %v2756_v35  ;;  %v1218_v2 = vadd.f32 %v1978_v58, %v1217_v62  ;;  %v2200_v3 = vpop.f32.mrb[19].mxu0 }
 0xf49   :  { %v2850_v4 = vadd.f32 %v1218_v2, %v2759_v38  ;;  %v1225_v5 = vsel %vm200_vm0, %v2847_v63, 0.0  ;;  %v1990_v2 = vld [vmem:[%s1918_s15] ss:$0 sm:$0xff] }
 0xf4a   :  { %1226 = vadd.xlane.f32.xlu0 %v1225_v5 }
 0xf4b   :  { %v1228_v48 = vsel %vm200_vm0, %v2850_v4, 0.0 }
 0xf4e   :  { %1229 = vadd.xlane.f32.xlu0 %v1228_v48 }
 0xfd7   :  { %v1227_v6 = vpop.xlane.xlu0 %1226 }
 0xfd8   :  { %v1231_v7 = vmul.f32 0.03125, %v1227_v6 }
 0xfda   :  { %v1233_v9 = vsub.f32 %v2847_v63, %v1231_v7 }
 0xfdb   :  { %v1230_v11 = vpop.xlane.xlu0 %1229 }
 0xfdc   :  { %v1232_v35 = vmul.f32 0.03125, %v1230_v11  ;;  %v1235_v12 = vmul.f32 %v1233_v9, %v1233_v9 }
 0xfde   :  { %v1234_v13 = vsub.f32 %v2850_v4, %v1232_v35  ;;  %v1237_v38 = vsel %vm200_vm0, %v1235_v12, 0.0 }
 0xfdf   :  { %1238 = vadd.xlane.f32.xlu0 %v1237_v38 }
 0xfe0   :  { %v1236_v16 = vmul.f32 %v1234_v13, %v1234_v13 }
 0xfe2   :  { %v1240_v17 = vsel %vm200_vm0, %v1236_v16, 0.0 }
 0xfe3   :  { %1241 = vadd.xlane.f32.xlu1 %v1240_v17 }
0x106c   :  { %v1239_v19 = vpop.xlane.xlu0 %1238 }
0x106d   :  { %v1243_v1 = vmul.f32 0.03125, %v1239_v19 }
0x106f   :  { %v1245_v20 = vadd.f32 1e-05, %v1243_v1 }
0x1070   :  { %v1242_v21 = vpop.xlane.xlu1 %1241 }
0x1071   :  { %2538 = vrsqrt.f32 %v1245_v20  ;;  %v1244_v22 = vmul.f32 0.03125, %v1242_v21 }
0x1073   :  { %v1246_v14 = vadd.f32 1e-05, %v1244_v22 }
0x1075   :  { %2540 = vrsqrt.f32 %v1246_v14  ;;  %v2472_v14 = vld [vmem:[%s1921_s19] sm:$0xff]  }
0x1076   :  { %2230 = vmatpush3.bf16.msra.mxu0 %v2472_v14  ;;  %v2481_v14 = vld [vmem:[%s1926_s10 + $0x38] sm:$0xff]  }
0x1077   :  { %2231 = vmatprep.subr.bf16.mxu0 %v2559_v15 }
0x107b   :  { %v2539_v23 = vpop.eup %2538 }
0x107c   :  { %v1249_v24 = vmul.f32 %v2539_v23, %v1233_v9  ;;  %v2473_v23 = vld [vmem:[%s1921_s19 + $0x8] sm:$0xff]  }
0x107d   :  { %2232 = vmatpush3.bf16.msra.mxu0 %v2473_v23 }
0x107e   :  { %v1257_v27 = vmul.f32 %v1984_v25, %v1249_v24  ;;  %v1576_v24 = vld [vmem:[%s2911_s23] sm:$0xff] }
0x107f   :  { %v2541_v26 = vpop.eup %2540 }
0x1080   :  { %v1250_v28 = vmul.f32 %v2541_v26, %v1234_v13  ;;  %v1265_v31 = vadd.f32 %v1985_v29, %v1257_v27  ;;  %v1578_v26 = vld [vmem:[%s2911_s23 + $0x10] sm:$0xff] }
0x1082   :  { %v1258_v30 = vmul.f32 %v1984_v25, %v1250_v28  ;;  %v1577_v25 = vld [vmem:[%s2911_s23 + $0x8] sm:$0xff]  ;;  %v1579_v28 = vld [vmem:[%s2911_s23 + $0x18] sm:$0xff] }
0x1083   :  { %v2327_v27 = vpack.c.bf16 %v1577_v25, %v1576_v24 }
0x1084   :  { %v1266_v32 = vadd.f32 %v1985_v29, %v1258_v30  ;;  %v2331_v29 = vpack.c.bf16 %v1579_v28, %v1578_v26  ;;  %v1580_v30 = vld [vmem:[%s2911_s23 + $0x20] sm:$0xff] }
0x1085   :  { %2328 = vmatprep.subr.bf16.mxu0 %v2327_v27  ;;  %v2005_v28 = vld [vmem:[%s1923_s13] ss:$0 sm:$0xff] }
0x1086   :  { %v1271_v33 = vpack.c.bf16 %v1266_v32, %v1265_v31  ;;  %v1581_v31 = vld [vmem:[%s2911_s23 + $0x28] sm:$0xff] }
0x1087   :  { %v2335_v32 = vpack.c.bf16 %v1581_v31, %v1580_v30  ;;  %v2006_v31 = vld [vmem:[%s1924_s17] ss:$0 sm:$0xff] }
0x1088   :  { %2206 = vmatmul.mubr.msk.bf16.vlgmr.msra.gmra.mrb[16].mxu1 %vm200_vm0, %v1271_v33  ;;  %v1582_v33 = vld [vmem:[%s2911_s23 + $0x30] sm:$0xff] }
0x1089   :  { %2225 = vmatprep.mubr.msk.bf16.mxu1 %vm2560_vm1, %v2559_v15  ;;  %2210 = vmatpush3.bf16.msra.mxu1 %v2464_v34  ;;  %v1583_v34 = vld [vmem:[%s2911_s23 + $0x38] sm:$0xff] }
0x108a   :  { %2211 = vmatprep.subr.bf16.mxu1 %v2559_v15 }
0x108d   :  { %2212 = vmatpush3.bf16.msra.mxu1 %v2465_v36  ;;  %v2339_v36 = vpack.c.bf16 %v1583_v34, %v1582_v33 }
0x108e   :  { %2213 = vmatprep.subr.bf16.mxu1 %v2559_v15 }
0x1091   :  { %2214 = vmatpush3.bf16.msra.mxu1 %v2466_v37  ;;  %v1584_v37 = vld [vmem:[%s2911_s23 + $0x40] sm:$0xff] }
0x1092   :  { %2215 = vmatprep.subr.bf16.mxu1 %v2559_v15 }
0x1095   :  { %2216 = vmatpush3.bf16.msra.mxu1 %v2467_v39  ;;  %v1585_v39 = vld [vmem:[%s2911_s23 + $0x48] sm:$0xff] }
0x1096   :  { %2217 = vmatprep.subr.bf16.mxu1 %v2559_v15 }
0x1099   :  { %2218 = vmatpush3.bf16.msra.mxu1 %v2468_v40  ;;  %v2343_v40 = vpack.c.bf16 %v1585_v39, %v1584_v37  ;;  %v2007_v39 = vld [vmem:[%s1927_s21] ss:$0 sm:$0xff] }
0x109a   :  { %2219 = vmatprep.subr.bf16.mxu1 %v2559_v15 }
0x109d   :  { %2220 = vmatpush3.bf16.msra.mxu1 %v2469_v41  ;;  %v1586_v41 = vld [vmem:[%s2911_s23 + $0x50] sm:$0xff] }
0x109e   :  { %2221 = vmatprep.subr.bf16.mxu1 %v2559_v15 }
0x10a1   :  { %2222 = vmatpush3.bf16.msra.mxu1 %v2470_v42  ;;  %v1587_v42 = vld [vmem:[%s2911_s23 + $0x58] sm:$0xff] }
0x10a2   :  { %2223 = vmatprep.subr.bf16.mxu1 %v2559_v15 }
0x10a5   :  { %2224 = vmatpush3.bf16.msra.mxu1 %v2471_v43  ;;  %v2347_v43 = vpack.c.bf16 %v1587_v42, %v1586_v41 }
0x10a6   :  { %2360 = vmatprep.subr.bf16.mxu1 %v2327_v27 }
0x115b   :  { %v1328_v8 = vpop.f32.mrb[16].mxu1 }
0x115c   :  { %v1329_v45 = vadd.f32 %v1986_v44, %v1328_v8  ;;  %v2207_v46 = vpop.f32.mrb[17].mxu1  ;;  %v1589_v8 = vld [vmem:[%s2911_s23 + $0x68] sm:$0xff] }
0x115d   :  { %v1331_v10 = vpop.f32.mrb[18].mxu1 }
0x115e   :  { %v1335_v47 = vsub.f32 0.0, %v1329_v45  ;;  %v1332_v49 = vadd.f32 %v1986_v44, %v1331_v10  ;;  %v2208_v50 = vpop.f32.mrb[19].mxu1  ;;  %v1588_v44 = vld [vmem:[%s2911_s23 + $0x60] sm:$0xff] }
0x1160   :  { %v1337_v51 = vmul.f32 1.442695, %v1335_v47  ;;  %v1336_v52 = vsub.f32 0.0, %v1332_v49 }
0x1162   :  { %2542 = vpow2.f32 %v1337_v51  ;;  %v1339_v53 = vmul.f32 1.442695, %v1336_v52 }
0x1164   :  { %2544 = vpow2.f32 %v1339_v53  ;;  %v1999_v53 = vld [vmem:[%s1919_s27] ss:$0 sm:$0xff] }
0x116c   :  { %v2543_v54 = vpop.eup %2542 }
0x116d   :  { %v1341_v55 = vadd.f32 1.0, %v2543_v54 }
0x116e   :  { %v2545_v56 = vpop.eup %2544 }
0x116f   :  { %2546 = vrcp.f32 %v1341_v55  ;;  %v1342_v57 = vadd.f32 1.0, %v2545_v56 }
0x1171   :  { %2548 = vrcp.f32 %v1342_v57 }
0x1179   :  { %v2547_v58 = vpop.eup %2546 }
0x117a   :  { %v1345_v60 = vmul.f32 %v2547_v58, %v1329_v45  ;;  %v2351_v45 = vpack.c.bf16 %v1589_v8, %v1588_v44  ;;  %v2000_v58 = vld [vmem:[%s1920_s1] ss:$0 sm:$0xff] }
0x117b   :  { %v2549_v59 = vpop.eup %2548 }
0x117c   :  { %v1346_v61 = vmul.f32 %v2549_v59, %v1332_v49 }
0x117e   :  { %v1363_v62 = vpack.c.bf16 %v1346_v61, %v1345_v60 }
0x1180   :  { %2226 = vmatmul.mubr.bf16.vlgmr.msra.gmra.mrb[20].mxu1 %v1363_v62 }
0x1181   :  { %2362 = vmatpush3.bf16.msra.mxu1 %v2327_v27 }
0x1182   :  { %2364 = vmatprep.subr.bf16.mxu1 %v2331_v29 }
0x1185   :  { %2366 = vmatpush3.bf16.msra.mxu1 %v2331_v29 }
0x1186   :  { %2368 = vmatprep.subr.bf16.mxu1 %v2335_v32 }
0x1189   :  { %2370 = vmatpush3.bf16.msra.mxu1 %v2335_v32 }
0x118a   :  { %2372 = vmatprep.subr.bf16.mxu1 %v2339_v36 }
0x118d   :  { %2374 = vmatpush3.bf16.msra.mxu1 %v2339_v36 }
0x118e   :  { %2376 = vmatprep.subr.bf16.mxu1 %v2343_v40 }
0x1191   :  { %2378 = vmatpush3.bf16.msra.mxu1 %v2343_v40 }
0x1192   :  { %2380 = vmatprep.subr.bf16.mxu1 %v2347_v43 }
0x1195   :  { %2382 = vmatpush3.bf16.msra.mxu1 %v2347_v43 }
0x1196   :  { %2384 = vmatprep.subr.bf16.mxu1 %v2351_v45 }
0x1199   :  { %2386 = vmatpush3.bf16.msra.mxu1 %v2351_v45 }
0x1253   :  { %v1453_v3 = vpop.f32.mrb[20].mxu1 }
0x1254   :  { %v1454_v5 = vadd.f32 %v1990_v2, %v1453_v3  ;;  %v2227_v48 = vpop.f32.mrb[21].mxu1  ;;  %v1591_v3 = vld [vmem:[%s2911_s23 + $0x78] sm:$0xff] }
0x1255   :  { %v1456_v6 = vpop.f32.mrb[22].mxu1  ;;  %v2001_v48 = vld [vmem:[%s1922_s6] ss:$0 sm:$0xff] }
0x1256   :  { %v1460_v7 = vmul.f32 0.5, %v1454_v5  ;;  %v1457_v9 = vadd.f32 %v1990_v2, %v1456_v6  ;;  %v2228_v11 = vpop.f32.mrb[23].mxu1  ;;  %v1590_v2 = vld [vmem:[%s2911_s23 + $0x70] sm:$0xff] }
0x1257   :  { %v2355_v5 = vpack.c.bf16 %v1591_v3, %v1590_v2 }
0x1258   :  { %v1461_v35 = vmul.f32 0.5, %v1457_v9  ;;  %v1462_v12 = vadd.f32 %v1460_v7, %v2847_v63 }
0x1259   :  { %2388 = vmatprep.subr.bf16.mxu1 %v2355_v5 }
0x125a   :  { %v1466_v13 = vsel %vm200_vm0, %v1462_v12, 0.0  ;;  %v1463_v38 = vadd.f32 %v1461_v35, %v2850_v4  ;;  %2390 = vmatpush3.bf16.msra.mxu1 %v2355_v5 }
0x125b   :  { %1467 = vadd.xlane.f32.xlu0 %v1466_v13  ;;  %v2474_v13 = vld [vmem:[%s1926_s10] sm:$0xff]  }
0x125c   :  { %v1469_v16 = vsel %vm200_vm0, %v1463_v38, 0.0 }
0x125d   :  { %1470 = vadd.xlane.f32.xlu1 %v1469_v16 }
0x12e8   :  { %v1468_v17 = vpop.xlane.xlu0 %1467 }
0x12e9   :  { %v1472_v18 = vmul.f32 0.03125, %v1468_v17 }
0x12ea   :  { %v1471_v0 = vpop.xlane.xlu1 %1470 }
0x12eb   :  { %v2894_v19 = vsub.f32 %v1462_v12, %v1472_v18  ;;  %v1473_v1 = vmul.f32 0.03125, %v1471_v0 }
0x12ed   :  { %v2896_v20 = vsub.f32 %v1463_v38, %v1473_v1  ;;  %v1476_v21 = vmul.f32 %v2894_v19, %v2894_v19  ;;  %v2475_v38 = vld [vmem:[%s1926_s10 + $0x8] sm:$0xff]  }
0x12ef   :  { %v1478_v63 = vsel %vm200_vm0, %v1476_v21, 0.0  ;;  %v1477_v4 = vmul.f32 %v2896_v20, %v2896_v20  ;;  %v2477_v21 = vld [vmem:[%s1926_s10 + $0x18] sm:$0xff]  }
0x12f0   :  { %1479 = vadd.xlane.f32.xlu0 %v1478_v63  ;;  %v2478_v63 = vld [vmem:[%s1926_s10 + $0x20] sm:$0xff]  }
0x12f1   :  { %v1481_v22 = vsel %vm200_vm0, %v1477_v4, 0.0  ;;  %v2479_v4 = vld [vmem:[%s1926_s10 + $0x28] sm:$0xff]  }
0x12f2   :  { %1482 = vadd.xlane.f32.xlu1 %v1481_v22  ;;  %v2480_v22 = vld [vmem:[%s1926_s10 + $0x30] sm:$0xff]  }
0x137d   :  { %v1480_v46 = vpop.xlane.xlu0 %1479 }
0x137e   :  { %v1484_v10 = vmul.f32 0.03125, %v1480_v46 }
0x137f   :  { %v1483_v47 = vpop.xlane.xlu1 %1482 }
0x1380   :  { %v1486_v49 = vadd.f32 1e-05, %v1484_v10  ;;  %v1485_v50 = vmul.f32 0.03125, %v1483_v47 }
0x1382   :  { %2550 = vrsqrt.f32 %v1486_v49  ;;  %v1487_v51 = vadd.f32 1e-05, %v1485_v50 }
0x1384   :  { %2552 = vrsqrt.f32 %v1487_v51 }
0x138c   :  { %v2551_v52 = vpop.eup %2550 }
0x138d   :  { %v1490_v54 = vmul.f32 %v2551_v52, %v2894_v19 }
0x138e   :  { %v2553_v55 = vpop.eup %2552 }
0x138f   :  { %v1498_v56 = vmul.f32 %v1999_v53, %v1490_v54  ;;  %v1491_v57 = vmul.f32 %v2553_v55, %v2896_v20  ;;  %v2476_v20 = vld [vmem:[%s1926_s10 + $0x10] sm:$0xff]  }
0x1391   :  { %v1499_v59 = vmul.f32 %v1999_v53, %v1491_v57  ;;  %v1506_v60 = vadd.f32 %v2000_v58, %v1498_v56 }
0x1393   :  { %v1507_v61 = vadd.f32 %v2000_v58, %v1499_v59 }
0x1395   :  { %v1512_v62 = vpack.c.bf16 %v1507_v61, %v1506_v60 }
0x1397   :  { %2234 = vmatmul.mubr.msk.bf16.vlgmr.msra.gmra.mrb[20].mxu0 %vm200_vm0, %v1512_v62 }
0x1398   :  { %2330 = vmatpush3.bf16.msra.mxu0 %v2327_v27 }
0x1399   :  { %2332 = vmatprep.subr.bf16.mxu0 %v2331_v29 }
0x139c   :  { %2334 = vmatpush3.bf16.msra.mxu0 %v2331_v29 }
0x139d   :  { %2336 = vmatprep.subr.bf16.mxu0 %v2335_v32 }
0x13a0   :  { %2338 = vmatpush3.bf16.msra.mxu0 %v2335_v32 }
0x13a1   :  { %2340 = vmatprep.subr.bf16.mxu0 %v2339_v36 }
0x13a4   :  { %2342 = vmatpush3.bf16.msra.mxu0 %v2339_v36 }
0x13a5   :  { %2344 = vmatprep.subr.bf16.mxu0 %v2343_v40 }
0x13a8   :  { %2346 = vmatpush3.bf16.msra.mxu0 %v2343_v40 }
0x13a9   :  { %2348 = vmatprep.subr.bf16.mxu0 %v2347_v43 }
0x13ac   :  { %2350 = vmatpush3.bf16.msra.mxu0 %v2347_v43 }
0x13ad   :  { %2352 = vmatprep.subr.bf16.mxu0 %v2351_v45 }
0x13b0   :  { %2354 = vmatpush3.bf16.msra.mxu0 %v2351_v45 }
0x13b1   :  { %2356 = vmatprep.subr.bf16.mxu0 %v2355_v5 }
0x13b4   :  { %2358 = vmatpush3.bf16.msra.mxu0 %v2355_v5 }
0x13b5   :  { %2307 = vmatprep.subr.bf16.mxu0 %v2559_v15 }
0x146a   :  { %v1569_v6 = vpop.f32.mrb[20].mxu0 }
0x146b   :  { %v1570_v7 = vadd.f32 %v2001_v48, %v1569_v6  ;;  %v2235_v9 = vpop.f32.mrb[21].mxu0 }
0x146c   :  { %v1572_v11 = vpop.f32.mrb[22].mxu0 }
0x146d   :  { %v1573_v35 = vadd.f32 %v2001_v48, %v1572_v11  ;;  %v2236_v12 = vpop.f32.mrb[23].mxu0  ;;  %2269 = vmatprep.mubr.f32.mxu0 %v1570_v7 }
0x146f   :  { %2270 = vmatmul.mubr.f32.vlgmr.msra.gmra.mrb[24].mxu0 %v1573_v35 }
0x1470   :  { %2323 = vmatprep.mubr.msk.bf16.mxu0 %vm2560_vm1, %v2559_v15  ;;  %2308 = vmatpush3.bf16.msra.mxu0 %v2474_v13 }
0x1471   :  { %2309 = vmatprep.subr.bf16.mxu0 %v2559_v15 }
0x1474   :  { %2310 = vmatpush3.bf16.msra.mxu0 %v2475_v38 }
0x1475   :  { %2311 = vmatprep.subr.bf16.mxu0 %v2559_v15 }
0x1478   :  { %2312 = vmatpush3.bf16.msra.mxu0 %v2476_v20 }
0x1479   :  { %2313 = vmatprep.subr.bf16.mxu0 %v2559_v15 }
0x147c   :  { %2314 = vmatpush3.bf16.msra.mxu0 %v2477_v21 }
0x147d   :  { %2315 = vmatprep.subr.bf16.mxu0 %v2559_v15 }
0x1480   :  { %2316 = vmatpush3.bf16.msra.mxu0 %v2478_v63 }
0x1481   :  { %2317 = vmatprep.subr.bf16.mxu0 %v2559_v15 }
0x1484   :  { %2318 = vmatpush3.bf16.msra.mxu0 %v2479_v4 }
0x1485   :  { %2319 = vmatprep.subr.bf16.mxu0 %v2559_v15 }
0x1488   :  { %2320 = vmatpush3.bf16.msra.mxu0 %v2480_v22 }
0x1489   :  { %2321 = vmatprep.subr.bf16.mxu0 %v2559_v15 }
0x148c   :  { %2322 = vmatpush3.bf16.msra.mxu0 %v2481_v14 }
0x1542   :  { %v2271_v16 = vpop.f32.mrb[24].mxu0 }
0x1543   :  { %v1668_v17 = vsub.f32 %v1573_v35, %v2271_v16  ;;  %v1658_v18 = vpop.f32.mrb[25].mxu0 }
0x1544   :  { %v1667_v0 = vsub.f32 %v1570_v7, %v1658_v18 }
0x1545   :  { %v1670_v1 = vmul.f32 %v1668_v17, %v1668_v17 }
0x1546   :  { %v1669_v19 = vmul.f32 %v1667_v0, %v1667_v0 }
0x1548   :  { %2304 = vmatprep.mubr.f32.mxu1 %v1669_v19 }
0x1549   :  { %2305 = vmatmul.mubr.f32.vlgmr.msra.gmra.mrb[24].mxu1 %v1670_v1 }
0x161c   :  { %v2306_v23 = vpop.f32.mrb[24].mxu1 }
0x161d   :  { %v1743_v24 = vadd.f32 1e-05, %v2306_v23  ;;  %v1737_v25 = vpop.f32.mrb[25].mxu1 }
0x161e   :  { %v1738_v26 = vadd.f32 1e-05, %v1737_v25 }
0x161f   :  { %2554 = vrsqrt.f32 %v1743_v24 }
0x1620   :  { %2556 = vrsqrt.f32 %v1738_v26 }
0x1629   :  { %v2555_v27 = vpop.eup %2554 }
0x162a   :  { %v2557_v15 = vpop.eup %2556  ;;  %v1749_v29 = vmul.f32 %v2555_v27, %v1668_v17 }
0x162b   :  { %v1748_v30 = vmul.f32 %v2557_v15, %v1667_v0 }
0x162c   :  { %v1758_v32 = vmul.f32 %v2005_v28, %v1749_v29 }
0x162d   :  { %v1757_v33 = vmul.f32 %v2005_v28, %v1748_v30 }
0x162e   :  { %v1767_v34 = vadd.f32 %v2006_v31, %v1758_v32 }
0x162f   :  { %v1766_v36 = vadd.f32 %v2006_v31, %v1757_v33 }
0x1631   :  { %v1784_v37 = vpack.c.bf16 %v1767_v34, %v1766_v36 }
0x1633   :  { %2324 = vmatmul.mubr.bf16.vlgmr.msra.gmra.mrb[28].mxu0 %v1784_v37 }
0x1706   :  { %v1874_v40 = vpop.f32.mrb[28].mxu0 }
0x1707   :  { %v1875_v41 = vadd.f32 %v2007_v39, %v1874_v40  ;;  %v2325_v42 = vpop.f32.mrb[29].mxu0 }
0x1708   :  { %v1877_v43 = vpop.f32.mrb[30].mxu0 }
0x1709   :  { %1881 = vst [vmem:[%s1928_s25] sm:$0xff] %v1875_v41  ;;  %v1878_v44 = vadd.f32 %v2007_v39, %v1877_v43  ;;  %v2326_v8 = vpop.f32.mrb[31].mxu0 }
0x170b   :  { %1882 = vst [vmem:[%s1928_s25 + $0x8] sm:$0xff] %v1878_v44 }

</bundles_post_ra>
